<compile_context>
chip_gen: v5e
topology: v5e:2x2
jax: 0.10.0
libtpu: 0.0.40
codegen_flags: <defaults>
</compile_context>

<pallas_src>
import functools

import jax
import jax.numpy as jnp
from jax.experimental import pallas as pl
from jax.experimental.pallas import tpu as pltpu

hidden_size = 64
problemDim = 2          # input_size
input_size = problemDim
num_classes = 2
num_layers = 1          # single-layer LSTM (num_layers=1 in the module)


def _lstm_classifier_kernel(x_ref, wih_ref, whh_ref, b_ref, gsc_ref, gof_ref,
                            wfc_ref, bfc_ref, out_ref, *, T, Bp):
    """x_ref:   [T*Bp, D_in]  time-major, batch zero-padded to Bp sublanes
       wih_ref: [D_in, 4*Hp]  W_ih^T, per-gate padded, i/f/o cols pre-scaled by 0.5
       whh_ref: [Hp,   4*Hp]  W_hh^T, padded + pre-scaled, bf16
       b_ref:   [1,    4*Hp]  b_ih + b_hh, padded + pre-scaled
       gsc_ref: [1,    4*Hp]  post-tanh scale  (0.5 on i/f/o lanes, 1.0 on g)
       gof_ref: [1,    4*Hp]  post-tanh offset (0.5 on i/f/o lanes, 0.0 on g)
       wfc_ref: [C,    Hp]    fc weight, one row per class, cols zero-padded
       bfc_ref: [1,    C]
       out_ref: [B,    C]
    """
    Hp = whh_ref.shape[0]
    G = 4 * Hp
    D = x_ref.shape[1]
    B = out_ref.shape[0]
    C = out_ref.shape[1]

    # ---- Hoisted input projection on the VPU (K = D_in = 2 is far too small
    # for the MXU, which has no native f32 path anyway): broadcast-FMAs over
    # all timesteps at once; bias broadcast exactly once, outside the loop.
    x = x_ref[...]                                        # [T*Bp, D] f32
    wih = wih_ref[...]                                    # [D, 4*Hp] f32
    xp = b_ref[...] + x[:, 0:1] * wih[0:1, :]             # [T*Bp, 4*Hp]
    for d in range(1, D):
        xp = xp + x[:, d:d + 1] * wih[d:d + 1, :]

    whh = whh_ref[...]                                    # [Hp, 4*Hp] bf16 (pre-cast)
    # Hoist the per-lane affine broadcasts out of the unrolled loop
    # (broadcast_in_dim is not CSE'd by JAX).
    gsc = jnp.broadcast_to(gsc_ref[...], (Bp, G))
    gof = jnp.broadcast_to(gof_ref[...], (Bp, G))

    h = jnp.zeros((Bp, Hp), jnp.float32)
    c = jnp.zeros((Bp, Hp), jnp.float32)

    # Fully unrolled recurrence (T static): every slice below is a constant,
    # tile-aligned vreg slice; the scheduler sees the whole MXU/EUP/VPU chain.
    for t in range(T):
        xpt = xp[t * Bp:(t + 1) * Bp, :]                  # [Bp, 4*Hp], free slice
        if t == 0:
            gates = xpt                                   # h == 0: skip first matmul
        else:
            gates = xpt + jnp.dot(h.astype(jnp.bfloat16), whh,
                                  preferred_element_type=jnp.float32)
        # One contiguous tanh over the whole gate block (single EUP region);
        # the 0.5 sigmoid pre-scale already lives in the weights/bias, so one
        # per-lane affine recovers exact sigmoid on i/f/o and plain tanh on g.
        act = jnp.tanh(gates) * gsc + gof                 # [Bp, 4*Hp]
        i_g = act[:, 0 * Hp:1 * Hp]
        f_g = act[:, 1 * Hp:2 * Hp]
        g_g = act[:, 2 * Hp:3 * Hp]
        o_g = act[:, 3 * Hp:4 * Hp]
        c = f_g * c + i_g * g_g
        h = o_g * jnp.tanh(c)

    # ---- fc head on the last hidden state (== h_n[-1] for a 1-layer LSTM).
    # N = num_classes is far too narrow for the MXU: VPU multiply + lane
    # reduction per class (exact f32), stored straight into the output cols.
    wfc = wfc_ref[...]                                    # [C, Hp], pad cols are 0
    for cc in range(C):
        col = jnp.sum(h * wfc[cc:cc + 1, :], axis=-1, keepdims=True)   # [Bp, 1]
        out_ref[:, cc:cc + 1] = col[:B, :] + bfc_ref[:, cc:cc + 1]


def _pad_gate_dim(a, H, Hp):
    """Pad the trailing 4*H gate axis to 4*Hp, per gate (keeps i,f,g,o order)."""
    lead = a.shape[:-1]
    a = a.reshape(lead + (4, H))
    a = jnp.pad(a, [(0, 0)] * len(lead) + [(0, 0), (0, Hp - H)])
    return a.reshape(lead + (4 * Hp,))


def _gate_lane_vec(vals, Hp):
    return jnp.concatenate(
        [jnp.full((1, Hp), v, jnp.float32) for v in vals], axis=-1)


def prepare_params(params):
    """One-time weight preprocessing -- keep this OUT of the per-call path."""
    w_ih, w_hh, b_ih, b_hh, w_fc, b_fc = params
    H = w_hh.shape[1]
    C = w_fc.shape[0]
    Hp = ((H + 127) // 128) * 128   # lane-pad hidden so gate slices are vreg-aligned

    # Fold the 0.5 of sigmoid(z) = 0.5*tanh(0.5*z) + 0.5 into the i/f/o gate
    # pre-activations (exact identity, not an approximation).
    pre = jnp.concatenate([jnp.full((1, H), s, jnp.float32)
                           for s in (0.5, 0.5, 1.0, 0.5)], axis=-1)     # [1, 4H]

    wih_p = _pad_gate_dim(w_ih.T.astype(jnp.float32) * pre, H, Hp)      # [D,  4Hp]
    whh_p = _pad_gate_dim(w_hh.T.astype(jnp.float32) * pre, H, Hp)      # [H,  4Hp]
    whh_p = jnp.pad(whh_p, ((0, Hp - H), (0, 0))).astype(jnp.bfloat16)  # [Hp, 4Hp] bf16
    b_p = _pad_gate_dim(
        (b_ih + b_hh).reshape(1, 4 * H).astype(jnp.float32) * pre, H, Hp)  # [1, 4Hp]
    gsc = _gate_lane_vec((0.5, 0.5, 1.0, 0.5), Hp)                      # [1, 4Hp]
    gof = _gate_lane_vec((0.5, 0.5, 0.0, 0.5), Hp)                      # [1, 4Hp]
    wfc_p = jnp.pad(w_fc.astype(jnp.float32), ((0, 0), (0, Hp - H)))    # [C,  Hp]
    bfc = b_fc.reshape(1, C).astype(jnp.float32)                        # [1,  C]
    return (wih_p, whh_p, b_p, gsc, gof, wfc_p, bfc)


@jax.jit
def lstm_classifier(x, prep):
    """x: [B, T, D_in] float32 (batch_first, as in the PyTorch module)."""
    wih_p, whh_p, b_p, gsc, gof, wfc_p, bfc = prep
    B, T, D = x.shape
    C = wfc_p.shape[0]
    Bp = ((B + 7) // 8) * 8   # sublane-pad batch so per-step slices are aligned

    # Only remaining per-call prep: lay x out time-major with the batch padded
    # to a sublane multiple so every per-step slice in the kernel is free and
    # tile-aligned.  ~0.5 KB; under jit this fuses into one tiny copy -- all
    # weight preprocessing lives in prepare_params().
    x_tm = jnp.transpose(x, (1, 0, 2)).astype(jnp.float32)              # [T, B,  D]
    x_tm = jnp.pad(x_tm, ((0, 0), (0, Bp - B), (0, 0)))                 # [T, Bp, D]
    x_flat = x_tm.reshape(T * Bp, D)                                    # [T*Bp, D]

    vmem = pl.BlockSpec(memory_space=pltpu.MemorySpace.VMEM)
    kernel = functools.partial(_lstm_classifier_kernel, T=T, Bp=Bp)
    return pl.pallas_call(
        kernel,
        out_shape=jax.ShapeDtypeStruct((B, C), jnp.float32),
        in_specs=[vmem] * 8,
        out_specs=vmem,
    )(x_flat, wih_p, whh_p, b_p, gsc, gof, wfc_p, bfc)


def _reference(x, params):
    """Pure-JAX f32 reference of the PyTorch forward pass (for validation)."""
    w_ih, w_hh, b_ih, b_hh, w_fc, b_fc = params
    B, T, _ = x.shape
    H = w_hh.shape[1]
    h = jnp.zeros((B, H), jnp.float32)
    c = jnp.zeros((B, H), jnp.float32)
    for t in range(T):
        gates = x[:, t, :] @ w_ih.T + b_ih + h @ w_hh.T + b_hh
        i_g = jax.nn.sigmoid(gates[:, 0 * H:1 * H])
        f_g = jax.nn.sigmoid(gates[:, 1 * H:2 * H])
        g_g = jnp.tanh(gates[:, 2 * H:3 * H])
        o_g = jax.nn.sigmoid(gates[:, 3 * H:4 * H])
        c = f_g * c + i_g * g_g
        h = o_g * jnp.tanh(c)
    return h @ w_fc.T + b_fc


def init_params(key, in_size, hid, n_classes):
    """Deterministic init matching PyTorch parameter shapes (uniform +/-1/sqrt(H))."""
    ks = jax.random.split(key, 6)
    bound = 1.0 / jnp.sqrt(hid)
    w_ih = jax.random.uniform(ks[0], (4 * hid, in_size), jnp.float32, -bound, bound)
    w_hh = jax.random.uniform(ks[1], (4 * hid, hid), jnp.float32, -bound, bound)
    b_ih = jax.random.uniform(ks[2], (4 * hid,), jnp.float32, -bound, bound)
    b_hh = jax.random.uniform(ks[3], (4 * hid,), jnp.float32, -bound, bound)
    w_fc = jax.random.uniform(ks[4], (n_classes, hid), jnp.float32, -bound, bound)
    b_fc = jax.random.uniform(ks[5], (n_classes,), jnp.float32, -bound, bound)
    return (w_ih, w_hh, b_ih, b_hh, w_fc, b_fc)


if __name__ == "__main__":
    key = jax.random.PRNGKey(0)
    k_x, k_p = jax.random.split(key)

    batch, seq = 2, 8
    x = jax.random.normal(k_x, (batch, seq, input_size), jnp.float32)
    params = init_params(k_p, input_size, hidden_size, num_classes)

    # One-time preprocessing (padding / transposes / pre-scaling / bf16 cast).
    prep = jax.block_until_ready(prepare_params(params))

    logits = jax.block_until_ready(lstm_classifier(x, prep))
    ref = _reference(x, params)
    assert logits.shape == (batch, num_classes)
    # bf16 is used only for the recurrent (h, W_hh) matmul operands (f32
    # accumulation); everything else is exact f32, hence the 1e-2 tolerance.
    err = jnp.max(jnp.abs(logits - ref))
    assert jnp.allclose(logits, ref, atol=1e-2, rtol=1e-2), f"max abs err {err}"
    print("KERNEL_OK")
</pallas_src>

<mosaic_0001>
module attributes {stable_mosaic.version = 11 : i64} {
  func.func @_lstm_classifier_kernel(%arg0: memref<64x2xf32, #tpu.memory_space<vmem>>, %arg1: memref<2x512xf32, #tpu.memory_space<vmem>>, %arg2: memref<128x512xbf16, #tpu.memory_space<vmem>>, %arg3: memref<1x512xf32, #tpu.memory_space<vmem>>, %arg4: memref<1x512xf32, #tpu.memory_space<vmem>>, %arg5: memref<1x512xf32, #tpu.memory_space<vmem>>, %arg6: memref<2x128xf32, #tpu.memory_space<vmem>>, %arg7: memref<1x2xf32, #tpu.memory_space<vmem>>, %arg8: memref<2x2xf32, #tpu.memory_space<vmem>>) attributes {dimension_semantics = [], scalar_prefetch = 0 : i64, scratch_operands = 0 : i64, tpu.core_type = #tpu.core_type<tc>} {
    %c0 = arith.constant 0 : index
    %c0_0 = arith.constant 0 : index
    %0 = vector.load %arg0[%c0, %c0_0] : memref<64x2xf32, #tpu.memory_space<vmem>>, vector<64x2xf32>
    %c0_1 = arith.constant 0 : index
    %c0_2 = arith.constant 0 : index
    %1 = vector.load %arg1[%c0_1, %c0_2] : memref<2x512xf32, #tpu.memory_space<vmem>>, vector<2x512xf32>
    %c0_3 = arith.constant 0 : index
    %c0_4 = arith.constant 0 : index
    %2 = vector.load %arg3[%c0_3, %c0_4] : memref<1x512xf32, #tpu.memory_space<vmem>>, vector<1x512xf32>
    %3 = vector.extract_strided_slice %0 {offsets = [0, 0], sizes = [64, 1], strides = [1, 1]} : vector<64x2xf32> to vector<64x1xf32>
    %4 = vector.extract_strided_slice %1 {offsets = [0, 0], sizes = [1, 512], strides = [1, 1]} : vector<2x512xf32> to vector<1x512xf32>
    %5 = vector.broadcast %3 : vector<64x1xf32> to vector<64x512xf32>
    %6 = vector.broadcast %4 : vector<1x512xf32> to vector<64x512xf32>
    %7 = arith.mulf %5, %6 : vector<64x512xf32>
    %8 = vector.broadcast %2 : vector<1x512xf32> to vector<64x512xf32>
    %9 = arith.addf %8, %7 : vector<64x512xf32>
    %10 = vector.extract_strided_slice %0 {offsets = [0, 1], sizes = [64, 1], strides = [1, 1]} : vector<64x2xf32> to vector<64x1xf32>
    %11 = vector.extract_strided_slice %1 {offsets = [1, 0], sizes = [1, 512], strides = [1, 1]} : vector<2x512xf32> to vector<1x512xf32>
    %12 = vector.broadcast %10 : vector<64x1xf32> to vector<64x512xf32>
    %13 = vector.broadcast %11 : vector<1x512xf32> to vector<64x512xf32>
    %14 = arith.mulf %12, %13 : vector<64x512xf32>
    %15 = arith.addf %9, %14 : vector<64x512xf32>
    %c0_5 = arith.constant 0 : index
    %c0_6 = arith.constant 0 : index
    %16 = vector.load %arg2[%c0_5, %c0_6] : memref<128x512xbf16, #tpu.memory_space<vmem>>, vector<128x512xbf16>
    %c0_7 = arith.constant 0 : index
    %c0_8 = arith.constant 0 : index
    %17 = vector.load %arg4[%c0_7, %c0_8] : memref<1x512xf32, #tpu.memory_space<vmem>>, vector<1x512xf32>
    %18 = vector.shape_cast %17 : vector<1x512xf32> to vector<1x512xf32>
    %19 = vector.broadcast %18 : vector<1x512xf32> to vector<8x512xf32>
    %c0_9 = arith.constant 0 : index
    %c0_10 = arith.constant 0 : index
    %20 = vector.load %arg5[%c0_9, %c0_10] : memref<1x512xf32, #tpu.memory_space<vmem>>, vector<1x512xf32>
    %21 = vector.shape_cast %20 : vector<1x512xf32> to vector<1x512xf32>
    %22 = vector.broadcast %21 : vector<1x512xf32> to vector<8x512xf32>
    %cst = arith.constant 0.000000e+00 : f32
    %23 = vector.broadcast %cst : f32 to vector<8x128xf32>
    %24 = vector.extract_strided_slice %15 {offsets = [0, 0], sizes = [8, 512], strides = [1, 1]} : vector<64x512xf32> to vector<8x512xf32>
    %25 = math.tanh %24 : vector<8x512xf32>
    %26 = arith.mulf %25, %19 : vector<8x512xf32>
    %27 = arith.addf %26, %22 : vector<8x512xf32>
    %28 = vector.extract_strided_slice %27 {offsets = [0, 0], sizes = [8, 128], strides = [1, 1]} : vector<8x512xf32> to vector<8x128xf32>
    %29 = vector.extract_strided_slice %27 {offsets = [0, 128], sizes = [8, 128], strides = [1, 1]} : vector<8x512xf32> to vector<8x128xf32>
    %30 = vector.extract_strided_slice %27 {offsets = [0, 256], sizes = [8, 128], strides = [1, 1]} : vector<8x512xf32> to vector<8x128xf32>
    %31 = vector.extract_strided_slice %27 {offsets = [0, 384], sizes = [8, 128], strides = [1, 1]} : vector<8x512xf32> to vector<8x128xf32>
    %32 = arith.mulf %29, %23 : vector<8x128xf32>
    %33 = arith.mulf %28, %30 : vector<8x128xf32>
    %34 = arith.addf %32, %33 : vector<8x128xf32>
    %35 = math.tanh %34 : vector<8x128xf32>
    %36 = arith.mulf %31, %35 : vector<8x128xf32>
    %37 = vector.extract_strided_slice %15 {offsets = [8, 0], sizes = [8, 512], strides = [1, 1]} : vector<64x512xf32> to vector<8x512xf32>
    %38 = arith.truncf %36 : vector<8x128xf32> to vector<8x128xbf16>
    %cst_11 = arith.constant dense<0.000000e+00> : vector<8x512xf32>
    %39 = tpu.matmul %38, %16, %cst_11 {dimension_numbers = #tpu.dot_dimension_numbers<[1], [0], [0], [1], [0, 0, 1, 1], [], []>} : vector<8x128xbf16>, vector<128x512xbf16>, vector<8x512xf32> -> vector<8x512xf32>
    %40 = arith.addf %37, %39 : vector<8x512xf32>
    %41 = math.tanh %40 : vector<8x512xf32>
    %42 = arith.mulf %41, %19 : vector<8x512xf32>
    %43 = arith.addf %42, %22 : vector<8x512xf32>
    %44 = vector.extract_strided_slice %43 {offsets = [0, 0], sizes = [8, 128], strides = [1, 1]} : vector<8x512xf32> to vector<8x128xf32>
    %45 = vector.extract_strided_slice %43 {offsets = [0, 128], sizes = [8, 128], strides = [1, 1]} : vector<8x512xf32> to vector<8x128xf32>
    %46 = vector.extract_strided_slice %43 {offsets = [0, 256], sizes = [8, 128], strides = [1, 1]} : vector<8x512xf32> to vector<8x128xf32>
    %47 = vector.extract_strided_slice %43 {offsets = [0, 384], sizes = [8, 128], strides = [1, 1]} : vector<8x512xf32> to vector<8x128xf32>
    %48 = arith.mulf %45, %34 : vector<8x128xf32>
    %49 = arith.mulf %44, %46 : vector<8x128xf32>
    %50 = arith.addf %48, %49 : vector<8x128xf32>
    %51 = math.tanh %50 : vector<8x128xf32>
    %52 = arith.mulf %47, %51 : vector<8x128xf32>
    %53 = vector.extract_strided_slice %15 {offsets = [16, 0], sizes = [8, 512], strides = [1, 1]} : vector<64x512xf32> to vector<8x512xf32>
    %54 = arith.truncf %52 : vector<8x128xf32> to vector<8x128xbf16>
    %cst_12 = arith.constant dense<0.000000e+00> : vector<8x512xf32>
    %55 = tpu.matmul %54, %16, %cst_12 {dimension_numbers = #tpu.dot_dimension_numbers<[1], [0], [0], [1], [0, 0, 1, 1], [], []>} : vector<8x128xbf16>, vector<128x512xbf16>, vector<8x512xf32> -> vector<8x512xf32>
    %56 = arith.addf %53, %55 : vector<8x512xf32>
    %57 = math.tanh %56 : vector<8x512xf32>
    %58 = arith.mulf %57, %19 : vector<8x512xf32>
    %59 = arith.addf %58, %22 : vector<8x512xf32>
    %60 = vector.extract_strided_slice %59 {offsets = [0, 0], sizes = [8, 128], strides = [1, 1]} : vector<8x512xf32> to vector<8x128xf32>
    %61 = vector.extract_strided_slice %59 {offsets = [0, 128], sizes = [8, 128], strides = [1, 1]} : vector<8x512xf32> to vector<8x128xf32>
    %62 = vector.extract_strided_slice %59 {offsets = [0, 256], sizes = [8, 128], strides = [1, 1]} : vector<8x512xf32> to vector<8x128xf32>
    %63 = vector.extract_strided_slice %59 {offsets = [0, 384], sizes = [8, 128], strides = [1, 1]} : vector<8x512xf32> to vector<8x128xf32>
    %64 = arith.mulf %61, %50 : vector<8x128xf32>
    %65 = arith.mulf %60, %62 : vector<8x128xf32>
    %66 = arith.addf %64, %65 : vector<8x128xf32>
    %67 = math.tanh %66 : vector<8x128xf32>
    %68 = arith.mulf %63, %67 : vector<8x128xf32>
    %69 = vector.extract_strided_slice %15 {offsets = [24, 0], sizes = [8, 512], strides = [1, 1]} : vector<64x512xf32> to vector<8x512xf32>
    %70 = arith.truncf %68 : vector<8x128xf32> to vector<8x128xbf16>
    %cst_13 = arith.constant dense<0.000000e+00> : vector<8x512xf32>
    %71 = tpu.matmul %70, %16, %cst_13 {dimension_numbers = #tpu.dot_dimension_numbers<[1], [0], [0], [1], [0, 0, 1, 1], [], []>} : vector<8x128xbf16>, vector<128x512xbf16>, vector<8x512xf32> -> vector<8x512xf32>
    %72 = arith.addf %69, %71 : vector<8x512xf32>
    %73 = math.tanh %72 : vector<8x512xf32>
    %74 = arith.mulf %73, %19 : vector<8x512xf32>
    %75 = arith.addf %74, %22 : vector<8x512xf32>
    %76 = vector.extract_strided_slice %75 {offsets = [0, 0], sizes = [8, 128], strides = [1, 1]} : vector<8x512xf32> to vector<8x128xf32>
    %77 = vector.extract_strided_slice %75 {offsets = [0, 128], sizes = [8, 128], strides = [1, 1]} : vector<8x512xf32> to vector<8x128xf32>
    %78 = vector.extract_strided_slice %75 {offsets = [0, 256], sizes = [8, 128], strides = [1, 1]} : vector<8x512xf32> to vector<8x128xf32>
    %79 = vector.extract_strided_slice %75 {offsets = [0, 384], sizes = [8, 128], strides = [1, 1]} : vector<8x512xf32> to vector<8x128xf32>
    %80 = arith.mulf %77, %66 : vector<8x128xf32>
    %81 = arith.mulf %76, %78 : vector<8x128xf32>
    %82 = arith.addf %80, %81 : vector<8x128xf32>
    %83 = math.tanh %82 : vector<8x128xf32>
    %84 = arith.mulf %79, %83 : vector<8x128xf32>
    %85 = vector.extract_strided_slice %15 {offsets = [32, 0], sizes = [8, 512], strides = [1, 1]} : vector<64x512xf32> to vector<8x512xf32>
    %86 = arith.truncf %84 : vector<8x128xf32> to vector<8x128xbf16>
    %cst_14 = arith.constant dense<0.000000e+00> : vector<8x512xf32>
    %87 = tpu.matmul %86, %16, %cst_14 {dimension_numbers = #tpu.dot_dimension_numbers<[1], [0], [0], [1], [0, 0, 1, 1], [], []>} : vector<8x128xbf16>, vector<128x512xbf16>, vector<8x512xf32> -> vector<8x512xf32>
    %88 = arith.addf %85, %87 : vector<8x512xf32>
    %89 = math.tanh %88 : vector<8x512xf32>
    %90 = arith.mulf %89, %19 : vector<8x512xf32>
    %91 = arith.addf %90, %22 : vector<8x512xf32>
    %92 = vector.extract_strided_slice %91 {offsets = [0, 0], sizes = [8, 128], strides = [1, 1]} : vector<8x512xf32> to vector<8x128xf32>
    %93 = vector.extract_strided_slice %91 {offsets = [0, 128], sizes = [8, 128], strides = [1, 1]} : vector<8x512xf32> to vector<8x128xf32>
    %94 = vector.extract_strided_slice %91 {offsets = [0, 256], sizes = [8, 128], strides = [1, 1]} : vector<8x512xf32> to vector<8x128xf32>
    %95 = vector.extract_strided_slice %91 {offsets = [0, 384], sizes = [8, 128], strides = [1, 1]} : vector<8x512xf32> to vector<8x128xf32>
    %96 = arith.mulf %93, %82 : vector<8x128xf32>
    %97 = arith.mulf %92, %94 : vector<8x128xf32>
    %98 = arith.addf %96, %97 : vector<8x128xf32>
    %99 = math.tanh %98 : vector<8x128xf32>
    %100 = arith.mulf %95, %99 : vector<8x128xf32>
    %101 = vector.extract_strided_slice %15 {offsets = [40, 0], sizes = [8, 512], strides = [1, 1]} : vector<64x512xf32> to vector<8x512xf32>
    %102 = arith.truncf %100 : vector<8x128xf32> to vector<8x128xbf16>
    %cst_15 = arith.constant dense<0.000000e+00> : vector<8x512xf32>
    %103 = tpu.matmul %102, %16, %cst_15 {dimension_numbers = #tpu.dot_dimension_numbers<[1], [0], [0], [1], [0, 0, 1, 1], [], []>} : vector<8x128xbf16>, vector<128x512xbf16>, vector<8x512xf32> -> vector<8x512xf32>
    %104 = arith.addf %101, %103 : vector<8x512xf32>
    %105 = math.tanh %104 : vector<8x512xf32>
    %106 = arith.mulf %105, %19 : vector<8x512xf32>
    %107 = arith.addf %106, %22 : vector<8x512xf32>
    %108 = vector.extract_strided_slice %107 {offsets = [0, 0], sizes = [8, 128], strides = [1, 1]} : vector<8x512xf32> to vector<8x128xf32>
    %109 = vector.extract_strided_slice %107 {offsets = [0, 128], sizes = [8, 128], strides = [1, 1]} : vector<8x512xf32> to vector<8x128xf32>
    %110 = vector.extract_strided_slice %107 {offsets = [0, 256], sizes = [8, 128], strides = [1, 1]} : vector<8x512xf32> to vector<8x128xf32>
    %111 = vector.extract_strided_slice %107 {offsets = [0, 384], sizes = [8, 128], strides = [1, 1]} : vector<8x512xf32> to vector<8x128xf32>
    %112 = arith.mulf %109, %98 : vector<8x128xf32>
    %113 = arith.mulf %108, %110 : vector<8x128xf32>
    %114 = arith.addf %112, %113 : vector<8x128xf32>
    %115 = math.tanh %114 : vector<8x128xf32>
    %116 = arith.mulf %111, %115 : vector<8x128xf32>
    %117 = vector.extract_strided_slice %15 {offsets = [48, 0], sizes = [8, 512], strides = [1, 1]} : vector<64x512xf32> to vector<8x512xf32>
    %118 = arith.truncf %116 : vector<8x128xf32> to vector<8x128xbf16>
    %cst_16 = arith.constant dense<0.000000e+00> : vector<8x512xf32>
    %119 = tpu.matmul %118, %16, %cst_16 {dimension_numbers = #tpu.dot_dimension_numbers<[1], [0], [0], [1], [0, 0, 1, 1], [], []>} : vector<8x128xbf16>, vector<128x512xbf16>, vector<8x512xf32> -> vector<8x512xf32>
    %120 = arith.addf %117, %119 : vector<8x512xf32>
    %121 = math.tanh %120 : vector<8x512xf32>
    %122 = arith.mulf %121, %19 : vector<8x512xf32>
    %123 = arith.addf %122, %22 : vector<8x512xf32>
    %124 = vector.extract_strided_slice %123 {offsets = [0, 0], sizes = [8, 128], strides = [1, 1]} : vector<8x512xf32> to vector<8x128xf32>
    %125 = vector.extract_strided_slice %123 {offsets = [0, 128], sizes = [8, 128], strides = [1, 1]} : vector<8x512xf32> to vector<8x128xf32>
    %126 = vector.extract_strided_slice %123 {offsets = [0, 256], sizes = [8, 128], strides = [1, 1]} : vector<8x512xf32> to vector<8x128xf32>
    %127 = vector.extract_strided_slice %123 {offsets = [0, 384], sizes = [8, 128], strides = [1, 1]} : vector<8x512xf32> to vector<8x128xf32>
    %128 = arith.mulf %125, %114 : vector<8x128xf32>
    %129 = arith.mulf %124, %126 : vector<8x128xf32>
    %130 = arith.addf %128, %129 : vector<8x128xf32>
    %131 = math.tanh %130 : vector<8x128xf32>
    %132 = arith.mulf %127, %131 : vector<8x128xf32>
    %133 = vector.extract_strided_slice %15 {offsets = [56, 0], sizes = [8, 512], strides = [1, 1]} : vector<64x512xf32> to vector<8x512xf32>
    %134 = arith.truncf %132 : vector<8x128xf32> to vector<8x128xbf16>
    %cst_17 = arith.constant dense<0.000000e+00> : vector<8x512xf32>
    %135 = tpu.matmul %134, %16, %cst_17 {dimension_numbers = #tpu.dot_dimension_numbers<[1], [0], [0], [1], [0, 0, 1, 1], [], []>} : vector<8x128xbf16>, vector<128x512xbf16>, vector<8x512xf32> -> vector<8x512xf32>
    %136 = arith.addf %133, %135 : vector<8x512xf32>
    %137 = math.tanh %136 : vector<8x512xf32>
    %138 = arith.mulf %137, %19 : vector<8x512xf32>
    %139 = arith.addf %138, %22 : vector<8x512xf32>
    %140 = vector.extract_strided_slice %139 {offsets = [0, 0], sizes = [8, 128], strides = [1, 1]} : vector<8x512xf32> to vector<8x128xf32>
    %141 = vector.extract_strided_slice %139 {offsets = [0, 128], sizes = [8, 128], strides = [1, 1]} : vector<8x512xf32> to vector<8x128xf32>
    %142 = vector.extract_strided_slice %139 {offsets = [0, 256], sizes = [8, 128], strides = [1, 1]} : vector<8x512xf32> to vector<8x128xf32>
    %143 = vector.extract_strided_slice %139 {offsets = [0, 384], sizes = [8, 128], strides = [1, 1]} : vector<8x512xf32> to vector<8x128xf32>
    %144 = arith.mulf %141, %130 : vector<8x128xf32>
    %145 = arith.mulf %140, %142 : vector<8x128xf32>
    %146 = arith.addf %144, %145 : vector<8x128xf32>
    %147 = math.tanh %146 : vector<8x128xf32>
    %148 = arith.mulf %143, %147 : vector<8x128xf32>
    %c0_18 = arith.constant 0 : index
    %c0_19 = arith.constant 0 : index
    %149 = vector.load %arg6[%c0_18, %c0_19] : memref<2x128xf32, #tpu.memory_space<vmem>>, vector<2x128xf32>
    %150 = vector.extract_strided_slice %149 {offsets = [0, 0], sizes = [1, 128], strides = [1, 1]} : vector<2x128xf32> to vector<1x128xf32>
    %151 = vector.broadcast %150 : vector<1x128xf32> to vector<8x128xf32>
    %152 = arith.mulf %148, %151 : vector<8x128xf32>
    %cst_20 = arith.constant dense<0.000000e+00> : vector<8xf32>
    %153 = vector.multi_reduction <add>, %152, %cst_20 [1] : vector<8x128xf32> to vector<8xf32>
    %154 = vector.shape_cast %153 : vector<8xf32> to vector<8x1xf32>
    %155 = vector.extract_strided_slice %154 {offsets = [0, 0], sizes = [2, 1], strides = [1, 1]} : vector<8x1xf32> to vector<2x1xf32>
    %c0_21 = arith.constant 0 : index
    %c0_22 = arith.constant 0 : index
    %156 = vector.load %arg7[%c0_21, %c0_22] : memref<1x2xf32, #tpu.memory_space<vmem>>, vector<1x1xf32>
    %157 = vector.broadcast %156 : vector<1x1xf32> to vector<2x1xf32>
    %158 = arith.addf %155, %157 : vector<2x1xf32>
    %c0_23 = arith.constant 0 : index
    %c0_24 = arith.constant 0 : index
    %159 = vector.load %arg8[%c0_23, %c0_24] : memref<2x2xf32, #tpu.memory_space<vmem>>, vector<2x1xf32>
    tpu.vector_store %arg8[%c0_23, %c0_24], %158 {strides = array<i32>} : memref<2x2xf32, #tpu.memory_space<vmem>>, vector<2x1xf32>,
    %160 = vector.extract_strided_slice %149 {offsets = [1, 0], sizes = [1, 128], strides = [1, 1]} : vector<2x128xf32> to vector<1x128xf32>
    %161 = vector.broadcast %160 : vector<1x128xf32> to vector<8x128xf32>
    %162 = arith.mulf %148, %161 : vector<8x128xf32>
    %cst_25 = arith.constant dense<0.000000e+00> : vector<8xf32>
    %163 = vector.multi_reduction <add>, %162, %cst_25 [1] : vector<8x128xf32> to vector<8xf32>
    %164 = vector.shape_cast %163 : vector<8xf32> to vector<8x1xf32>
    %165 = vector.extract_strided_slice %164 {offsets = [0, 0], sizes = [2, 1], strides = [1, 1]} : vector<8x1xf32> to vector<2x1xf32>
    %c0_26 = arith.constant 0 : index
    %c1 = arith.constant 1 : index
    %166 = vector.load %arg7[%c0_26, %c1] : memref<1x2xf32, #tpu.memory_space<vmem>>, vector<1x1xf32>
    %167 = vector.broadcast %166 : vector<1x1xf32> to vector<2x1xf32>
    %168 = arith.addf %165, %167 : vector<2x1xf32>
    %c0_27 = arith.constant 0 : index
    %c1_28 = arith.constant 1 : index
    %169 = vector.load %arg8[%c0_27, %c1_28] : memref<2x2xf32, #tpu.memory_space<vmem>>, vector<2x1xf32>
    tpu.vector_store %arg8[%c0_27, %c1_28], %168 {strides = array<i32>} : memref<2x2xf32, #tpu.memory_space<vmem>>, vector<2x1xf32>,
    return
  }
}

</mosaic_0001>

<bundles_post_ra>
// kernel: lstm_classifier.1
= control target key start
LH: loop header
LB: loop body
LE: loop exit
PB: predicated region body
PF: predicated region fallthrough
CT: control target
= control target key end

     0   :  { %13 = vsyncpa [#allocation3], 0  ;;  %s2037_s0 = inlined_call_operand.vmem [shape: f32[64,2], index: 0, kind: input, shape index: {}]   ;;  %s2038_s1 = inlined_call_operand.vmem [shape: f32[2,512], index: 1, kind: input, shape index: {}]   ;;  %s2039_s2 = inlined_call_operand.hbm [shape: bf16[128,512], index: 2, kind: input, shape index: {}]   ;;  %s2040_s3 = inlined_call_operand.vmem [shape: f32[1,512], index: 3, kind: input, shape index: {}]   ;;  %s2041_s4 = inlined_call_operand.vmem [shape: f32[1,512], index: 4, kind: input, shape index: {}]   ;;  %s2042_s5 = inlined_call_operand.vmem [shape: f32[1,512], index: 5, kind: input, shape index: {}]   ;;  %s2043_s6 = inlined_call_operand.vmem [shape: f32[2,128], index: 6, kind: input, shape index: {}]   ;;  %s2044_s7 = inlined_call_operand.vmem [shape: f32[1,2], index: 7, kind: input, shape index: {}]   ;;  %s2045_s8 = inlined_call_operand.hbm [shape: f32[2,2], index: 8, kind: output, shape index: {}]  }
   0x1   :  { %14 = vsyncpa [#allocation4], 0  ;;  %s23_s29 = sshll.u32 %s2039_s2, 4  ;;  %s1390_s30 = smov [#allocation2]   ;;  %s24_s29 = int_to_ptr.hbm [resolvable:$true] %s23_s29 }
   0x2   :  { %s25_s9 = sshll.u32 %s1390_s30, 4  ;;  %s1391_s10 = smov 256   ;;  %s26_s9 = int_to_ptr.vmem [resolvable:$true] %s25_s9 }
   0x3   :  { %s1392_s11 = smov 16  }
   0x4   :  { %31 = dma.hbm_to_vmem [thread:$0]  %s24_s29, 4096, %s26_s9, [#allocation3], %s1391_s10, %s1391_s10, %s1392_s11  }
   0x5   :  { %1386 = dma.done.wait [#allocation3], 4096  }
   0x6   :  { %1387 = vsyncadd [#allocation3], 4294963200  ;;  %v2046_v0 = vmov 0   ;;  %v46_v1 = vld [vmem:[%s2037_s0] sm:$0xff]  ;;  %v2048_v2 = vmov 1   ;;  %s1395_s2 = smov [#allocation5]  }
   0x7   :  { %1243 = vset.pattern.permute.xlu0 %v2046_v0  ;;  %1245 = vset.pattern.permute.xlu1 %v2046_v0  ;;  %v1191_v3 = vld [vmem:[#allocation2 + $0xe0] sm:$0xf]  ;;  %v1235_v4 = vld [vmem:[#allocation2 + $0xec] sm:$0xf0]  ;;  %v1233_v5 = vld [vmem:[#allocation2 + $0xe4] sm:$0xf] }
   0x8   :  { %1247 = vset.pattern.permute.xlu2 %v2046_v0  ;;  %58 = vperm.xlu0 %1243, %v46_v1   ;;  %v1452_v6 = vor.u32 %v1235_v4, %v1191_v3  ;;  %v1193_v7 = vld [vmem:[#allocation2 + $0xf0] sm:$0xf0]  ;;  %v1199_v8 = vld [vmem:[#allocation2 + $0xe8] sm:$0xf]  ;;  %v1236_v9 = vld [vmem:[#allocation2 + $0xf4] sm:$0xf0] }
   0x9   :  { %v1454_v10 = vor.u32 %v1233_v5, %v1193_v7  ;;  %v1456_v11 = vor.u32 %v1236_v9, %v1199_v8  ;;  %v1234_v12 = vld [vmem:[#allocation2 + $0xec] sm:$0xf]  ;;  %v1201_v13 = vld [vmem:[#allocation2 + $0xf8] sm:$0xf0]  ;;  %v1175_v15 = vld [vmem:[#allocation2 + $0xc0] sm:$0xf] }
   0xa   :  { %520 = vmatpush.bf16.msra.mxu0 %v1452_v6  ;;  %v1459_v14 = vor.u32 %v1234_v12, %v1201_v13  ;;  %v1231_v16 = vld [vmem:[#allocation2 + $0xcc] sm:$0xf0]  ;;  %v1229_v17 = vld [vmem:[#allocation2 + $0xc4] sm:$0xf]  ;;  %v1177_v19 = vld [vmem:[#allocation2 + $0xd0] sm:$0xf0] }
   0xb   :  { %533 = vmatpush.bf16.msra.mxu1 %v1454_v10  ;;  %546 = vmatpush.bf16.msra.mxu2 %v1456_v11  ;;  %v1464_v18 = vor.u32 %v1231_v16, %v1175_v15  ;;  %v1183_v20 = vld [vmem:[#allocation2 + $0xc8] sm:$0xf]  ;;  %v1232_v21 = vld [vmem:[#allocation2 + $0xd4] sm:$0xf0]  ;;  %v1466_v22 = vor.u32 %v1229_v17, %v1177_v19  ;;  %v1230_v24 = vld [vmem:[#allocation2 + $0xcc] sm:$0xf] }
   0xc   :  { %559 = vmatpush.bf16.msra.mxu3 %v1459_v14  ;;  %v1468_v23 = vor.u32 %v1232_v21, %v1183_v20  ;;  %v1185_v25 = vld [vmem:[#allocation2 + $0xd8] sm:$0xf0]  ;;  %v1473_v26 = vld [vmem:[%s2038_s1] sm:$0xff]  ;;  %v1227_v29 = vld [vmem:[#allocation2 + $0xac] sm:$0xf0]  ;;  %s1067_s15 = sshll.u32 %s2045_s8, 4  ;;  %s1068_s15 = int_to_ptr.hbm [resolvable:$true] %s1067_s15 }
   0xd   :  { %v1476_v27 = vor.u32 %v1230_v24, %v1185_v25  ;;  %v1159_v28 = vld [vmem:[#allocation2 + $0xa0] sm:$0xf]  ;;  %v1225_v30 = vld [vmem:[#allocation2 + $0xa4] sm:$0xf]  ;;  %v1161_v32 = vld [vmem:[#allocation2 + $0xb0] sm:$0xf0] }
   0xe   :  { %521 = vmatpush.bf16.msra.mxu0 %v1464_v18  ;;  %v1481_v31 = vor.u32 %v1227_v29, %v1159_v28  ;;  %v1167_v33 = vld [vmem:[#allocation2 + $0xa8] sm:$0xf]  ;;  %v1228_v34 = vld [vmem:[#allocation2 + $0xb4] sm:$0xf0]  ;;  %v1483_v35 = vor.u32 %v1225_v30, %v1161_v32  ;;  %v1226_v37 = vld [vmem:[#allocation2 + $0xac] sm:$0xf] }
   0xf   :  { %534 = vmatpush.bf16.msra.mxu1 %v1466_v22  ;;  %547 = vmatpush.bf16.msra.mxu2 %v1468_v23  ;;  %v1485_v36 = vor.u32 %v1228_v34, %v1167_v33  ;;  %v1169_v38 = vld [vmem:[#allocation2 + $0xb8] sm:$0xf0]  ;;  %v97_v39 = vperm.slane %v1473_v26, 0  ;;  %v98_v40 = vperm.slane %v1473_v26, 2  ;;  %v1143_v42 = vld [vmem:[#allocation2 + $0x80] sm:$0xf] }
  0x10   :  { %1244 = vset.pattern.permute.xlu0 %v2048_v2  ;;  %560 = vmatpush.bf16.msra.mxu3 %v1476_v27  ;;  %v1490_v41 = vor.u32 %v1226_v37, %v1169_v38  ;;  %v1223_v43 = vld [vmem:[#allocation2 + $0x8c] sm:$0xf0]  ;;  %v1221_v44 = vld [vmem:[#allocation2 + $0x84] sm:$0xf]  ;;  %v1145_v46 = vld [vmem:[#allocation2 + $0x90] sm:$0xf0] }
  0x11   :  { %183 = vperm.xlu0 %1244, %v46_v1   ;;  %v1495_v45 = vor.u32 %v1223_v43, %v1143_v42  ;;  %v1151_v47 = vld [vmem:[#allocation2 + $0x88] sm:$0xf]  ;;  %v1224_v48 = vld [vmem:[#allocation2 + $0x94] sm:$0xf0]  ;;  %v99_v49 = vperm.slane %v1473_v26, 4  ;;  %v1498_v50 = vor.u32 %v1221_v44, %v1145_v46  ;;  %v100_v54 = vperm.slane %v1473_v26, 6 }
  0x12   :  { %522 = vmatpush.bf16.msra.mxu0 %v1481_v31  ;;  %v1500_v51 = vor.u32 %v1224_v48, %v1151_v47  ;;  %v1222_v52 = vld [vmem:[#allocation2 + $0x8c] sm:$0xf]  ;;  %v1153_v53 = vld [vmem:[#allocation2 + $0x98] sm:$0xf0]  ;;  %v1503_v55 = vperm.slane %v97_v39, 0  ;;  %v1505_v56 = vperm.slane %v98_v40, 0 }
  0x13   :  { %535 = vmatpush.bf16.msra.mxu1 %v1483_v35  ;;  %548 = vmatpush.bf16.msra.mxu2 %v1485_v36  ;;  %v1508_v57 = vor.u32 %v1222_v52, %v1153_v53  ;;  %v1127_v58 = vld [vmem:[#allocation2 + $0x60] sm:$0xf]  ;;  %v1219_v59 = vld [vmem:[#allocation2 + $0x6c] sm:$0xf0]  ;;  %v1217_v60 = vld [vmem:[#allocation2 + $0x64] sm:$0xf] }
  0x14   :  { %561 = vmatpush.bf16.msra.mxu3 %v1490_v41  ;;  %2084 = vst [vmem:[#allocation8_spill] sm:$0xff] %v1503_v55  ;;  %v1513_v61 = vor.u32 %v1219_v59, %v1127_v58  ;;  %v1129_v62 = vld [vmem:[#allocation2 + $0x70] sm:$0xf0]  ;;  %v1135_v63 = vld [vmem:[#allocation2 + $0x68] sm:$0xf]  ;;  %v1543_v44 = vperm.slane %v99_v49, 0 }
  0x15   :  { %2085 = vst [vmem:[#allocation9_spill] sm:$0xff] %v1505_v56  ;;  %v1220_v1 = vld [vmem:[#allocation2 + $0x74] sm:$0xf0]  ;;  %v1515_v3 = vor.u32 %v1217_v60, %v1129_v62  ;;  %v1218_v5 = vld [vmem:[#allocation2 + $0x6c] sm:$0xf]  ;;  %v214_v46 = vperm.slane %v1473_v26, 1 }
  0x16   :  { %523 = vmatpush.bf16.msra.mxu0 %v1495_v45  ;;  %v1517_v4 = vor.u32 %v1220_v1, %v1135_v63  ;;  %v1137_v7 = vld [vmem:[#allocation2 + $0x78] sm:$0xf0]  ;;  %v1111_v8 = vld [vmem:[#allocation2 + $0x40] sm:$0xf]  ;;  %v1215_v12 = vld [vmem:[#allocation2 + $0x4c] sm:$0xf0] }
  0x17   :  { %536 = vmatpush.bf16.msra.mxu1 %v1498_v50  ;;  %549 = vmatpush.bf16.msra.mxu2 %v1500_v51  ;;  %v1520_v9 = vor.u32 %v1218_v5, %v1137_v7  ;;  %v1213_v13 = vld [vmem:[#allocation2 + $0x44] sm:$0xf]  ;;  %v1113_v15 = vld [vmem:[#allocation2 + $0x50] sm:$0xf0]  ;;  %v1524_v16 = vor.u32 %v1215_v12, %v1111_v8  ;;  %v1119_v19 = vld [vmem:[#allocation2 + $0x48] sm:$0xf] }
  0x18   :  { %562 = vmatpush.bf16.msra.mxu3 %v1508_v57  ;;  %v1526_v17 = vor.u32 %v1213_v13, %v1113_v15  ;;  %v1216_v20 = vld [vmem:[#allocation2 + $0x54] sm:$0xf0]  ;;  %v1214_v21 = vld [vmem:[#allocation2 + $0x4c] sm:$0xf]  ;;  %v1531_v24 = vld [vmem:[%s2040_s3] sm:$0xf] }
  0x19   :  { %1250 = vset.pattern.permute.xlu0 %v2046_v0  ;;  %v1534_v25 = vor.u32 %v1216_v20, %v1119_v19  ;;  %v1121_v28 = vld [vmem:[#allocation2 + $0x58] sm:$0xf0]  ;;  %v1095_v29 = vld [vmem:[#allocation2 + $0x20] sm:$0xf]  ;;  %v1211_v30 = vld [vmem:[#allocation2 + $0x2c] sm:$0xf0] }
  0x1a   :  { %524 = vmatpush.bf16.msra.mxu0 %v1513_v61  ;;  %v1536_v32 = vor.u32 %v1214_v21, %v1121_v28  ;;  %v1209_v33 = vld [vmem:[#allocation2 + $0x24] sm:$0xf]  ;;  %v1097_v34 = vld [vmem:[#allocation2 + $0x30] sm:$0xf0]  ;;  %v1103_v37 = vld [vmem:[#allocation2 + $0x28] sm:$0xf]  ;;  %v1541_v39 = vor.u32 %v1211_v30, %v1095_v29 }
  0x1b   :  { %537 = vmatpush.bf16.msra.mxu1 %v1515_v3  ;;  %550 = vmatpush.bf16.msra.mxu2 %v1517_v4  ;;  %v1212_v40 = vld [vmem:[#allocation2 + $0x34] sm:$0xf0]  ;;  %v1210_v42 = vld [vmem:[#allocation2 + $0x2c] sm:$0xf]  ;;  %v1105_v43 = vld [vmem:[#allocation2 + $0x38] sm:$0xf0]  ;;  %v1547_v47 = vor.u32 %v1209_v33, %v1097_v34 }
  0x1c   :  { %563 = vmatpush.bf16.msra.mxu3 %v1520_v9  ;;  %2086 = vst [vmem:[#allocation10_spill] sm:$0xff] %v1543_v44  ;;  %v1079_v48 = vld [vmem:[#allocation2] sm:$0xf]  ;;  %v1207_v52 = vld [vmem:[#allocation2 + $0xc] sm:$0xf0]  ;;  %v215_v53 = vperm.slane %v1473_v26, 3  ;;  %v1553_v59 = vor.u32 %v1212_v40, %v1103_v37  ;;  %v1555_v49 = vor.u32 %v1210_v42, %v1105_v43 }
  0x1d   :  { %v216_v58 = vperm.slane %v1473_v26, 5  ;;  %v1205_v60 = vld [vmem:[#allocation2 + $0x4] sm:$0xf]  ;;  %v1081_v62 = vld [vmem:[#allocation2 + $0x10] sm:$0xf0]  ;;  %v1558_v63 = vperm.slane %v1531_v24, 0  ;;  %v1570_v13 = vor.u32 %v1207_v52, %v1079_v48 }
  0x1e   :  { %525 = vmatpush.bf16.msra.mxu0 %v1524_v16  ;;  %v1087_v1 = vld [vmem:[#allocation2 + $0x8] sm:$0xf]  ;;  %v1208_v5 = vld [vmem:[#allocation2 + $0x14] sm:$0xf0]  ;;  %v1564_v8 = vperm.slane %v1531_v24, 1  ;;  %v1567_v12 = vperm.slane %v1531_v24, 2  ;;  %v1579_v29 = vor.u32 %v1205_v60, %v1081_v62 }
  0x1f   :  { %538 = vmatpush.bf16.msra.mxu1 %v1526_v17  ;;  %551 = vmatpush.bf16.msra.mxu2 %v1534_v25  ;;  %2087 = vst [vmem:[#allocation11_spill] sm:$0xff] %v1558_v63  ;;  %v47_v7 = vld [vmem:[%s2037_s0 + $0x8] sm:$0xff]  ;;  %v1089_v19 = vld [vmem:[#allocation2 + $0x18] sm:$0xf0]  ;;  %v1576_v28 = vperm.slane %v214_v46, 1  ;;  %v1583_v33 = vperm.slane %v215_v53, 1  ;;  %v1589_v37 = vor.u32 %v1208_v5, %v1087_v1 }
  0x20   :  { %564 = vmatpush.bf16.msra.mxu3 %v1536_v32  ;;  %2088 = vst [vmem:[#allocation12_spill] sm:$0xff] %v1564_v8  ;;  %v1206_v15 = vld [vmem:[#allocation2 + $0xc] sm:$0xf]  ;;  %63 = vperm.xlu1 %1245, %v47_v7   ;;  %v1585_v34 = vperm.slane %v216_v58, 1  ;;  %v217_v40 = vperm.slane %v1473_v26, 7  ;;  %v1597_v43 = vperm.slane %v100_v54, 0 }
  0x21   :  { %2089 = vst [vmem:[#allocation13_spill] sm:$0xff] %v1567_v12  ;;  %v1592_v42 = vor.u32 %v1206_v15, %v1089_v19  ;;  %v1614_v15 = vperm.slane %v1531_v24, 3  ;;  %v332_v24 = vld [vmem:[%s2042_s5] sm:$0xf]  ;;  %vm1047_vm0 = vcmask 1024   ;;  %vm1058_vm1 = vcmask 9224  }
  0x22   :  { %526 = vmatpush.bf16.msra.mxu0 %v1541_v39  ;;  %2090 = vst [vmem:[#allocation14_spill] sm:$0xff] %v1570_v13  ;;  %v1608_v26 = vperm.slane %v217_v40, 1 }
  0x23   :  { %2091 = vst [vmem:[#allocation15_spill] sm:$0xff] %v1576_v28  ;;  %539 = vmatpush.bf16.msra.mxu1 %v1547_v47  ;;  %552 = vmatpush.bf16.msra.mxu2 %v1553_v59 }
  0x24   :  { %2092 = vst [vmem:[#allocation16_spill] sm:$0xff] %v1579_v29  ;;  %565 = vmatpush.bf16.msra.mxu3 %v1555_v49 }
  0x25   :  { %2093 = vst [vmem:[#allocation17_spill] sm:$0xff] %v1583_v33 }
  0x26   :  { %2094 = vst [vmem:[#allocation18_spill] sm:$0xff] %v1585_v34  ;;  %527 = vmatpush.bf16.msra.mxu0 %v1570_v13 }
  0x27   :  { %2095 = vst [vmem:[#allocation19_spill] sm:$0xff] %v1589_v37  ;;  %540 = vmatpush.bf16.msra.mxu1 %v1579_v29  ;;  %553 = vmatpush.bf16.msra.mxu2 %v1589_v37 }
  0x28   :  { %2096 = vst [vmem:[#allocation20_spill] sm:$0xff] %v1592_v42  ;;  %566 = vmatpush.bf16.msra.mxu3 %v1592_v42  ;;  %1246 = vset.pattern.permute.xlu1 %v2048_v2 }
  0x29   :  { %2097 = vst [vmem:[#allocation21_spill] sm:$0xff] %v1597_v43  ;;  %187 = vperm.xlu1 %1246, %v47_v7  }
  0x2a   :  { %594 = vmatpush.bf16.msrb.mxu0 %v1452_v6  ;;  %2098 = vst [vmem:[#allocation22_spill] sm:$0xff] %v1608_v26 }
  0x2b   :  { %607 = vmatpush.bf16.msrb.mxu1 %v1454_v10  ;;  %2099 = vst [vmem:[#allocation23_spill] sm:$0xff] %v1614_v15  ;;  %620 = vmatpush.bf16.msrb.mxu2 %v1456_v11 }
  0x2c   :  { %633 = vmatpush.bf16.msrb.mxu3 %v1459_v14 }
  0x2e   :  { %595 = vmatpush.bf16.msrb.mxu0 %v1464_v18 }
  0x2f   :  { %608 = vmatpush.bf16.msrb.mxu1 %v1466_v22  ;;  %621 = vmatpush.bf16.msrb.mxu2 %v1468_v23 }
  0x30   :  { %634 = vmatpush.bf16.msrb.mxu3 %v1476_v27 }
  0x31   :  { %1249 = vset.pattern.permute.xlu1 %v2046_v0 }
  0x32   :  { %596 = vmatpush.bf16.msrb.mxu0 %v1481_v31 }
  0x33   :  { %609 = vmatpush.bf16.msrb.mxu1 %v1483_v35  ;;  %622 = vmatpush.bf16.msrb.mxu2 %v1485_v36 }
  0x34   :  { %635 = vmatpush.bf16.msrb.mxu3 %v1490_v41 }
  0x36   :  { %597 = vmatpush.bf16.msrb.mxu0 %v1495_v45 }
  0x37   :  { %610 = vmatpush.bf16.msrb.mxu1 %v1498_v50  ;;  %623 = vmatpush.bf16.msrb.mxu2 %v1500_v51 }
  0x38   :  { %636 = vmatpush.bf16.msrb.mxu3 %v1508_v57 }
  0x3a   :  { %598 = vmatpush.bf16.msrb.mxu0 %v1513_v61 }
  0x3b   :  { %611 = vmatpush.bf16.msrb.mxu1 %v1515_v3  ;;  %624 = vmatpush.bf16.msrb.mxu2 %v1517_v4 }
  0x3c   :  { %637 = vmatpush.bf16.msrb.mxu3 %v1520_v9 }
  0x3e   :  { %599 = vmatpush.bf16.msrb.mxu0 %v1524_v16 }
  0x3f   :  { %612 = vmatpush.bf16.msrb.mxu1 %v1526_v17  ;;  %625 = vmatpush.bf16.msrb.mxu2 %v1534_v25 }
  0x40   :  { %638 = vmatpush.bf16.msrb.mxu3 %v1536_v32 }
  0x42   :  { %600 = vmatpush.bf16.msrb.mxu0 %v1541_v39 }
  0x43   :  { %613 = vmatpush.bf16.msrb.mxu1 %v1547_v47  ;;  %626 = vmatpush.bf16.msrb.mxu2 %v1553_v59 }
  0x44   :  { %639 = vmatpush.bf16.msrb.mxu3 %v1555_v49 }
  0x46   :  { %601 = vmatpush.bf16.msrb.mxu0 %v1570_v13 }
  0x47   :  { %614 = vmatpush.bf16.msrb.mxu1 %v1579_v29  ;;  %627 = vmatpush.bf16.msrb.mxu2 %v1589_v37 }
  0x48   :  { %640 = vmatpush.bf16.msrb.mxu3 %v1592_v42 }
  0x7a   :  { %v1538_v38 = vpop.permute.xlu0 %58 }
  0x7b   :  { %v109_v20 = vmul.f32 %v1503_v55, %v1538_v38  ;;  %v110_v21 = vmul.f32 %v1505_v56, %v1538_v38  ;;  %v111_v30 = vmul.f32 %v1543_v44, %v1538_v38  ;;  %v112_v19 = vmul.f32 %v1597_v43, %v1538_v38 }
  0x7d   :  { %v150_v46 = vadd.f32 %v1558_v63, %v109_v20  ;;  %v151_v48 = vadd.f32 %v1564_v8, %v110_v21  ;;  %v152_v53 = vadd.f32 %v1567_v12, %v111_v30  ;;  %v322_v20 = vld [vmem:[%s2041_s4] sm:$0xf]  ;;  %v153_v38 = vadd.f32 %v1614_v15, %v112_v19 }
  0x7e   :  { %v1630_v7 = vperm.slane %v322_v20, 0  ;;  %v1633_v30 = vperm.slane %v322_v20, 1  ;;  %v1637_v40 = vperm.slane %v322_v20, 2 }
  0x83   :  { %v184_v52 = vpop.permute.xlu0 %183 }
  0x84   :  { %v226_v58 = vmul.f32 %v1576_v28, %v184_v52  ;;  %v227_v60 = vmul.f32 %v1583_v33, %v184_v52  ;;  %v228_v62 = vmul.f32 %v1585_v34, %v184_v52  ;;  %v229_v21 = vmul.f32 %v1608_v26, %v184_v52 }
  0x86   :  { %v258_v54 = vadd.f32 %v226_v58, %v150_v46  ;;  %v259_v1 = vadd.f32 %v227_v60, %v151_v48  ;;  %v260_v5 = vadd.f32 %v228_v62, %v152_v53  ;;  %v1639_v46 = vperm.slane %v332_v24, 0 }
  0x87   :  { %v261_v48 = vadd.f32 %v229_v21, %v153_v38  ;;  %v1642_v53 = vperm.slane %v332_v24, 1  ;;  %v1644_v60 = vperm.slane %v332_v24, 2 }
  0x88   :  { %1258 = vtanh.f32 %v258_v54 }
  0x89   :  { %1260 = vtanh.f32 %v259_v1 }
  0x8a   :  { %1262 = vtanh.f32 %v260_v5 }
  0x8b   :  { %1264 = vtanh.f32 %v261_v48  ;;  %v1661_v48 = vperm.slane %v322_v20, 3 }
  0x8e   :  { %v1259_v52 = vpop.eup %1258 }
  0x8f   :  { %v1261_v58 = vpop.eup %1260  ;;  %v346_v62 = vmul.f32 %v1259_v52, %v1630_v7 }
  0x90   :  { %v1263_v54 = vpop.eup %1262  ;;  %v347_v1 = vmul.f32 %v1261_v58, %v1633_v30 }
  0x91   :  { %v348_v5 = vmul.f32 %v1263_v54, %v1637_v40  ;;  %v350_v19 = vadd.f32 %v346_v62, %v1639_v46  ;;  %v1265_v54 = vpop.eup %1264 }
  0x92   :  { %v351_v21 = vadd.f32 %v347_v1, %v1642_v53  ;;  %v1670_v1 = vperm.slane %v332_v24, 3 }
  0x93   :  { %v352_v38 = vadd.f32 %v348_v5, %v1644_v60  ;;  %v349_v5 = vmul.f32 %v1265_v54, %v1661_v48 }
  0x94   :  { %v354_v52 = vmul.f32 0.0, %v351_v21 }
  0x95   :  { %v355_v58 = vmul.f32 %v352_v38, %v350_v19  ;;  %v353_v20 = vadd.f32 %v349_v5, %v1670_v1  ;;  %v64_v38 = vpop.permute.xlu1 %63 }
  0x96   :  { %v115_v0 = vmul.f32 %v1543_v44, %v64_v38 }
  0x97   :  { %v1663_v62 = vadd.f32 %v355_v58, %v354_v52  ;;  %v114_v52 = vmul.f32 %v1505_v56, %v64_v38  ;;  %v113_v58 = vmul.f32 %v1503_v55, %v64_v38 }
  0x98   :  { %v156_v56 = vadd.f32 %v1567_v12, %v115_v0 }
  0x99   :  { %1266 = vtanh.f32 %v1663_v62  ;;  %v155_v5 = vadd.f32 %v1564_v8, %v114_v52  ;;  %v116_v52 = vmul.f32 %v1597_v43, %v64_v38 }
  0x9b   :  { %v157_v0 = vadd.f32 %v1614_v15, %v116_v52 }
  0x9d   :  { %v188_v54 = vpop.permute.xlu1 %187 }
  0x9e   :  { %v232_v55 = vmul.f32 %v1585_v34, %v188_v54 }
  0x9f   :  { %v1267_v19 = vpop.eup %1266 }
  0xa0   :  { %v358_v21 = vmul.f32 %v1267_v19, %v353_v20  ;;  %v231_v20 = vmul.f32 %v1583_v33, %v188_v54  ;;  %v154_v19 = vadd.f32 %v1558_v63, %v113_v58  ;;  %v49_v58 = vld [vmem:[%s2037_s0 + $0x18] sm:$0xff] }
  0xa1   :  { %73 = vperm.xlu1 %1249, %v49_v58  }
  0xa2   :  { %v359_v24 = vpack.c.bf16 %v358_v21, %v358_v21  ;;  %v230_v21 = vmul.f32 %v1576_v28, %v188_v54 }
  0xa4   :  { %528 = vmatmul.bf16.vlgmr.msra.gmra.mxu0 %v359_v24  ;;  %541 = vmatmul.bf16.vlgmr.msra.gmra.mxu1 %v359_v24  ;;  %v262_v2 = vadd.f32 %v230_v21, %v154_v19 }
  0xa5   :  { %554 = vmatmul.bf16.vlgmr.msra.gmra.mxu2 %v359_v24  ;;  %567 = vmatmul.bf16.vlgmr.msra.gmra.mxu3 %v359_v24  ;;  %v263_v24 = vadd.f32 %v231_v20, %v155_v5  ;;  %v48_v5 = vld [vmem:[%s2037_s0 + $0x10] sm:$0xff]  ;;  %v264_v20 = vadd.f32 %v232_v55, %v156_v56 }
  0xa6   :  { %668 = vmatpush.bf16.msra.mxu0 %v1452_v6  ;;  %681 = vmatpush.bf16.msra.mxu1 %v1454_v10 }
  0xa7   :  { %694 = vmatpush.bf16.msra.mxu2 %v1456_v11  ;;  %707 = vmatpush.bf16.msra.mxu3 %v1459_v14 }
  0xa8   :  { %68 = vperm.xlu2 %1247, %v48_v5  }
  0xaa   :  { %669 = vmatpush.bf16.msra.mxu0 %v1464_v18  ;;  %682 = vmatpush.bf16.msra.mxu1 %v1466_v22 }
  0xab   :  { %695 = vmatpush.bf16.msra.mxu2 %v1468_v23  ;;  %708 = vmatpush.bf16.msra.mxu3 %v1476_v27 }
  0xae   :  { %670 = vmatpush.bf16.msra.mxu0 %v1481_v31  ;;  %683 = vmatpush.bf16.msra.mxu1 %v1483_v35 }
  0xaf   :  { %696 = vmatpush.bf16.msra.mxu2 %v1485_v36  ;;  %709 = vmatpush.bf16.msra.mxu3 %v1490_v41 }
  0xb2   :  { %671 = vmatpush.bf16.msra.mxu0 %v1495_v45  ;;  %684 = vmatpush.bf16.msra.mxu1 %v1498_v50 }
  0xb3   :  { %697 = vmatpush.bf16.msra.mxu2 %v1500_v51  ;;  %710 = vmatpush.bf16.msra.mxu3 %v1508_v57 }
  0xb6   :  { %672 = vmatpush.bf16.msra.mxu0 %v1513_v61  ;;  %685 = vmatpush.bf16.msra.mxu1 %v1515_v3 }
  0xb7   :  { %698 = vmatpush.bf16.msra.mxu2 %v1517_v4  ;;  %711 = vmatpush.bf16.msra.mxu3 %v1520_v9 }
  0xba   :  { %673 = vmatpush.bf16.msra.mxu0 %v1524_v16  ;;  %686 = vmatpush.bf16.msra.mxu1 %v1526_v17 }
  0xbb   :  { %699 = vmatpush.bf16.msra.mxu2 %v1534_v25  ;;  %712 = vmatpush.bf16.msra.mxu3 %v1536_v32 }
  0xbe   :  { %674 = vmatpush.bf16.msra.mxu0 %v1541_v39  ;;  %687 = vmatpush.bf16.msra.mxu1 %v1547_v47 }
  0xbf   :  { %700 = vmatpush.bf16.msra.mxu2 %v1553_v59  ;;  %713 = vmatpush.bf16.msra.mxu3 %v1555_v49 }
  0xc2   :  { %675 = vmatpush.bf16.msra.mxu0 %v1570_v13  ;;  %688 = vmatpush.bf16.msra.mxu1 %v1579_v29 }
  0xc3   :  { %701 = vmatpush.bf16.msra.mxu2 %v1589_v37  ;;  %714 = vmatpush.bf16.msra.mxu3 %v1592_v42 }
 0x121   :  { %v529_v37 = vpop.f32.mrf.mxu0  ;;  %v542_v42 = vpop.f32.mrf.mxu1 }
 0x122   :  { %v573_v29 = vadd.f32 %v542_v42, %v263_v24  ;;  %v572_v13 = vadd.f32 %v529_v37, %v262_v2  ;;  %v233_v37 = vmul.f32 %v1608_v26, %v188_v54 }
 0x124   :  { %1268 = vtanh.f32 %v573_v29  ;;  %v265_v24 = vadd.f32 %v233_v37, %v157_v0 }
 0x125   :  { %1270 = vtanh.f32 %v572_v13  ;;  %v2100_v13 = vmov 1  }
 0x126   :  { %1248 = vset.pattern.permute.xlu2 %v2100_v13  ;;  %1251 = vset.pattern.permute.xlu1 %v2100_v13 }
 0x127   :  { %191 = vperm.xlu2 %1248, %v48_v5  }
 0x128   :  { %v555_v2 = vpop.f32.mrf.mxu2  ;;  %v568_v42 = vpop.f32.mrf.mxu3 }
 0x129   :  { %v574_v38 = vadd.f32 %v555_v2, %v264_v20  ;;  %v531_v29 = vpop.f32.mrf.mxu0  ;;  %v544_v19 = vpop.f32.mrf.mxu1  ;;  %v575_v12 = vadd.f32 %v568_v42, %v265_v24 }
 0x12a   :  { %v1269_v21 = vpop.eup %1268 }
 0x12b   :  { %1272 = vtanh.f32 %v574_v38  ;;  %v1271_v43 = vpop.eup %1270  ;;  %v581_v34 = vmul.f32 %v1269_v21, %v1633_v30  ;;  %v2101_v21 = vmov 0  }
 0x12c   :  { %v580_v55 = vmul.f32 %v1271_v43, %v1630_v7  ;;  %1274 = vtanh.f32 %v575_v12 }
 0x12d   :  { %v585_v20 = vadd.f32 %v581_v34, %v1642_v53 }
 0x12e   :  { %v584_v0 = vadd.f32 %v580_v55, %v1639_v46  ;;  %v2104_v55 = vld [vmem:[#allocation19_spill] sm:$0xff] }
 0x12f   :  { %v588_v42 = vmul.f32 %v585_v20, %v1663_v62  ;;  %195 = vperm.xlu2 %1248, %v49_v58   ;;  %v2102_v62 = vld [vmem:[#allocation14_spill] sm:$0xff]  ;;  %v2103_v58 = vld [vmem:[#allocation16_spill] sm:$0xff] }
 0x130   :  { %v557_v56 = vpop.f32.mrf.mxu2  ;;  %v570_v52 = vpop.f32.mrf.mxu3 }
 0x131   :  { %v1273_v54 = vpop.eup %1272  ;;  %v2105_v56 = vld [vmem:[#allocation20_spill] sm:$0xff]  ;;  %v69_v52 = vpop.permute.xlu2 %68 }
 0x132   :  { %v582_v2 = vmul.f32 %v1273_v54, %v1637_v40  ;;  %v1275_v29 = vpop.eup %1274  ;;  %v2106_v54 = vld [vmem:[#allocation9_spill] sm:$0xff] }
 0x133   :  { %v583_v43 = vmul.f32 %v1275_v29, %v1661_v48  ;;  %v118_v20 = vmul.f32 %v2106_v54, %v69_v52  ;;  %v2108_v54 = vld [vmem:[#allocation13_spill] sm:$0xff] }
 0x134   :  { %v586_v37 = vadd.f32 %v582_v2, %v1644_v60  ;;  %v2107_v2 = vld [vmem:[#allocation8_spill] sm:$0xff] }
 0x135   :  { %v587_v34 = vadd.f32 %v583_v43, %v1670_v1 }
 0x136   :  { %v589_v38 = vmul.f32 %v586_v37, %v584_v0  ;;  %v117_v0 = vmul.f32 %v2107_v2, %v69_v52  ;;  %v2109_v2 = vld [vmem:[#allocation18_spill] sm:$0xff] }
 0x137   :  { %1252 = vset.pattern.permute.xlu2 %v2101_v21 }
 0x138   :  { %v1743_v19 = vadd.f32 %v589_v38, %v588_v42  ;;  %v159_v42 = vadd.f32 %v1564_v8, %v118_v20  ;;  %v158_v29 = vadd.f32 %v1558_v63, %v117_v0 }
 0x13a   :  { %1276 = vtanh.f32 %v1743_v19 }
 0x140   :  { %v1277_v5 = vpop.eup %1276 }
 0x141   :  { %v592_v12 = vmul.f32 %v1277_v5, %v587_v34  ;;  %v119_v5 = vmul.f32 %v1543_v44, %v69_v52 }
 0x143   :  { %v593_v24 = vpack.c.bf16 %v592_v12, %v592_v12 }
 0x145   :  { %602 = vmatmul.bf16.vlgmr.msrb.gmra.mxu0 %v593_v24  ;;  %615 = vmatmul.bf16.vlgmr.msrb.gmra.mxu1 %v593_v24 }
 0x146   :  { %628 = vmatmul.bf16.vlgmr.msrb.gmra.mxu2 %v593_v24  ;;  %641 = vmatmul.bf16.vlgmr.msrb.gmra.mxu3 %v593_v24 }
 0x147   :  { %742 = vmatpush.bf16.msrb.mxu0 %v1452_v6  ;;  %755 = vmatpush.bf16.msrb.mxu1 %v1454_v10 }
 0x148   :  { %768 = vmatpush.bf16.msrb.mxu2 %v1456_v11  ;;  %781 = vmatpush.bf16.msrb.mxu3 %v1459_v14 }
 0x14b   :  { %743 = vmatpush.bf16.msrb.mxu0 %v1464_v18  ;;  %756 = vmatpush.bf16.msrb.mxu1 %v1466_v22 }
 0x14c   :  { %769 = vmatpush.bf16.msrb.mxu2 %v1468_v23  ;;  %782 = vmatpush.bf16.msrb.mxu3 %v1476_v27 }
 0x14f   :  { %744 = vmatpush.bf16.msrb.mxu0 %v1481_v31  ;;  %757 = vmatpush.bf16.msrb.mxu1 %v1483_v35 }
 0x150   :  { %770 = vmatpush.bf16.msrb.mxu2 %v1485_v36  ;;  %783 = vmatpush.bf16.msrb.mxu3 %v1490_v41 }
 0x153   :  { %745 = vmatpush.bf16.msrb.mxu0 %v1495_v45  ;;  %758 = vmatpush.bf16.msrb.mxu1 %v1498_v50 }
 0x154   :  { %771 = vmatpush.bf16.msrb.mxu2 %v1500_v51  ;;  %784 = vmatpush.bf16.msrb.mxu3 %v1508_v57 }
 0x157   :  { %746 = vmatpush.bf16.msrb.mxu0 %v1513_v61  ;;  %759 = vmatpush.bf16.msrb.mxu1 %v1515_v3 }
 0x158   :  { %772 = vmatpush.bf16.msrb.mxu2 %v1517_v4  ;;  %785 = vmatpush.bf16.msrb.mxu3 %v1520_v9 }
 0x15b   :  { %747 = vmatpush.bf16.msrb.mxu0 %v1524_v16  ;;  %760 = vmatpush.bf16.msrb.mxu1 %v1526_v17 }
 0x15c   :  { %773 = vmatpush.bf16.msrb.mxu2 %v1534_v25  ;;  %786 = vmatpush.bf16.msrb.mxu3 %v1536_v32 }
 0x15f   :  { %748 = vmatpush.bf16.msrb.mxu0 %v1541_v39  ;;  %761 = vmatpush.bf16.msrb.mxu1 %v1547_v47 }
 0x160   :  { %774 = vmatpush.bf16.msrb.mxu2 %v1553_v59  ;;  %787 = vmatpush.bf16.msrb.mxu3 %v1555_v49 }
 0x163   :  { %749 = vmatpush.bf16.msrb.mxu0 %v2102_v62  ;;  %762 = vmatpush.bf16.msrb.mxu1 %v2103_v58  ;;  %v2110_v62 = vld [vmem:[#allocation21_spill] sm:$0xff] }
 0x164   :  { %775 = vmatpush.bf16.msrb.mxu2 %v2104_v55  ;;  %788 = vmatpush.bf16.msrb.mxu3 %v2105_v56  ;;  %v160_v55 = vadd.f32 %v2108_v54, %v119_v5  ;;  %v120_v20 = vmul.f32 %v2110_v62, %v69_v52 }
 0x181   :  { %v192_v37 = vpop.permute.xlu2 %191 }
 0x182   :  { %v235_v38 = vmul.f32 %v1583_v33, %v192_v37  ;;  %v234_v43 = vmul.f32 %v1576_v28, %v192_v37  ;;  %v236_v58 = vmul.f32 %v2109_v2, %v192_v37  ;;  %v161_v28 = vadd.f32 %v1614_v15, %v120_v20 }
 0x184   :  { %v267_v34 = vadd.f32 %v235_v38, %v159_v42  ;;  %v266_v12 = vadd.f32 %v234_v43, %v158_v29  ;;  %v268_v33 = vadd.f32 %v236_v58, %v160_v55  ;;  %v237_v42 = vmul.f32 %v1608_v26, %v192_v37 }
 0x1c2   :  { %v603_v24 = vpop.f32.mrf.mxu0  ;;  %v616_v21 = vpop.f32.mrf.mxu1 }
 0x1c3   :  { %v647_v13 = vadd.f32 %v616_v21, %v267_v34  ;;  %v646_v56 = vadd.f32 %v603_v24, %v266_v12  ;;  %v269_v34 = vadd.f32 %v237_v42, %v161_v28 }
 0x1c5   :  { %1278 = vtanh.f32 %v647_v13 }
 0x1c6   :  { %1280 = vtanh.f32 %v646_v56 }
 0x1c9   :  { %v629_v0 = vpop.f32.mrf.mxu2  ;;  %v642_v38 = vpop.f32.mrf.mxu3 }
 0x1ca   :  { %v648_v29 = vadd.f32 %v629_v0, %v268_v33  ;;  %v605_v43 = vpop.f32.mrf.mxu0  ;;  %v618_v44 = vpop.f32.mrf.mxu1  ;;  %v649_v24 = vadd.f32 %v642_v38, %v269_v34 }
 0x1cb   :  { %v1279_v21 = vpop.eup %1278 }
 0x1cc   :  { %1282 = vtanh.f32 %v648_v29  ;;  %v1281_v5 = vpop.eup %1280  ;;  %v655_v12 = vmul.f32 %v1279_v21, %v1633_v30 }
 0x1cd   :  { %v654_v13 = vmul.f32 %v1281_v5, %v1630_v7  ;;  %1284 = vtanh.f32 %v649_v24  ;;  %v2112_v5 = vld [vmem:[#allocation16_spill] sm:$0xff] }
 0x1ce   :  { %v659_v52 = vadd.f32 %v655_v12, %v1642_v53  ;;  %v2113_v12 = vld [vmem:[#allocation19_spill] sm:$0xff]  ;;  %v2114_v24 = vld [vmem:[#allocation20_spill] sm:$0xff] }
 0x1cf   :  { %v658_v33 = vadd.f32 %v654_v13, %v1639_v46  ;;  %v74_v13 = vpop.permute.xlu1 %73 }
 0x1d0   :  { %v662_v28 = vmul.f32 %v659_v52, %v1743_v19  ;;  %v2111_v19 = vld [vmem:[#allocation14_spill] sm:$0xff] }
 0x1d1   :  { %v631_v56 = vpop.f32.mrf.mxu2  ;;  %v644_v58 = vpop.f32.mrf.mxu3 }
 0x1d2   :  { %v1283_v55 = vpop.eup %1282  ;;  %v2115_v56 = vld [vmem:[#allocation9_spill] sm:$0xff] }
 0x1d3   :  { %v656_v37 = vmul.f32 %v1283_v55, %v1637_v40  ;;  %v1285_v0 = vpop.eup %1284  ;;  %v122_v58 = vmul.f32 %v2115_v56, %v74_v13  ;;  %v2116_v55 = vld [vmem:[#allocation8_spill] sm:$0xff] }
 0x1d4   :  { %v657_v38 = vmul.f32 %v1285_v0, %v1661_v48  ;;  %v121_v52 = vmul.f32 %v2116_v55, %v74_v13  ;;  %v2118_v0 = vld [vmem:[#allocation15_spill] sm:$0xff] }
 0x1d5   :  { %v660_v44 = vadd.f32 %v656_v37, %v1644_v60  ;;  %v196_v37 = vpop.permute.xlu2 %195 }
 0x1d6   :  { %v661_v29 = vadd.f32 %v657_v38, %v1670_v1  ;;  %v238_v38 = vmul.f32 %v2118_v0, %v196_v37  ;;  %v240_v55 = vmul.f32 %v2109_v2, %v196_v37 }
 0x1d7   :  { %v663_v20 = vmul.f32 %v660_v44, %v658_v33  ;;  %v163_v33 = vadd.f32 %v1564_v8, %v122_v58  ;;  %v2117_v44 = vld [vmem:[#allocation17_spill] sm:$0xff]  ;;  %v124_v58 = vmul.f32 %v2110_v62, %v74_v13 }
 0x1d9   :  { %v1800_v42 = vadd.f32 %v663_v20, %v662_v28  ;;  %v239_v28 = vmul.f32 %v2117_v44, %v196_v37  ;;  %v162_v20 = vadd.f32 %v1558_v63, %v121_v52  ;;  %v50_v52 = vld [vmem:[%s2037_s0 + $0x20] sm:$0xff] }
 0x1da   :  { %199 = vperm.xlu1 %1251, %v50_v52   ;;  %78 = vperm.xlu0 %1250, %v50_v52  }
 0x1db   :  { %1286 = vtanh.f32 %v1800_v42 }
 0x1e1   :  { %v1287_v43 = vpop.eup %1286 }
 0x1e2   :  { %v666_v21 = vmul.f32 %v1287_v43, %v661_v29  ;;  %v2119_v29 = vld [vmem:[#allocation10_spill] sm:$0xff] }
 0x1e3   :  { %v123_v43 = vmul.f32 %v2119_v29, %v74_v13 }
 0x1e4   :  { %v667_v34 = vpack.c.bf16 %v666_v21, %v666_v21  ;;  %v271_v21 = vadd.f32 %v239_v28, %v163_v33  ;;  %v165_v33 = vadd.f32 %v1614_v15, %v124_v58  ;;  %v241_v28 = vmul.f32 %v1608_v26, %v196_v37 }
 0x1e5   :  { %v164_v56 = vadd.f32 %v2108_v54, %v123_v43 }
 0x1e6   :  { %676 = vmatmul.bf16.vlgmr.msra.gmra.mxu0 %v667_v34  ;;  %689 = vmatmul.bf16.vlgmr.msra.gmra.mxu1 %v667_v34 }
 0x1e7   :  { %702 = vmatmul.bf16.vlgmr.msra.gmra.mxu2 %v667_v34  ;;  %715 = vmatmul.bf16.vlgmr.msra.gmra.mxu3 %v667_v34  ;;  %v270_v34 = vadd.f32 %v238_v38, %v162_v20  ;;  %v272_v0 = vadd.f32 %v240_v55, %v164_v56 }
 0x1e8   :  { %816 = vmatpush.bf16.msra.mxu0 %v1452_v6  ;;  %829 = vmatpush.bf16.msra.mxu1 %v1454_v10 }
 0x1e9   :  { %842 = vmatpush.bf16.msra.mxu2 %v1456_v11  ;;  %855 = vmatpush.bf16.msra.mxu3 %v1459_v14 }
 0x1ec   :  { %817 = vmatpush.bf16.msra.mxu0 %v1464_v18  ;;  %830 = vmatpush.bf16.msra.mxu1 %v1466_v22 }
 0x1ed   :  { %843 = vmatpush.bf16.msra.mxu2 %v1468_v23  ;;  %856 = vmatpush.bf16.msra.mxu3 %v1476_v27 }
 0x1f0   :  { %818 = vmatpush.bf16.msra.mxu0 %v1481_v31  ;;  %831 = vmatpush.bf16.msra.mxu1 %v1483_v35 }
 0x1f1   :  { %844 = vmatpush.bf16.msra.mxu2 %v1485_v36  ;;  %857 = vmatpush.bf16.msra.mxu3 %v1490_v41 }
 0x1f4   :  { %819 = vmatpush.bf16.msra.mxu0 %v1495_v45  ;;  %832 = vmatpush.bf16.msra.mxu1 %v1498_v50 }
 0x1f5   :  { %845 = vmatpush.bf16.msra.mxu2 %v1500_v51  ;;  %858 = vmatpush.bf16.msra.mxu3 %v1508_v57 }
 0x1f8   :  { %820 = vmatpush.bf16.msra.mxu0 %v1513_v61  ;;  %833 = vmatpush.bf16.msra.mxu1 %v1515_v3 }
 0x1f9   :  { %846 = vmatpush.bf16.msra.mxu2 %v1517_v4  ;;  %859 = vmatpush.bf16.msra.mxu3 %v1520_v9 }
 0x1fc   :  { %821 = vmatpush.bf16.msra.mxu0 %v1524_v16  ;;  %834 = vmatpush.bf16.msra.mxu1 %v1526_v17 }
 0x1fd   :  { %847 = vmatpush.bf16.msra.mxu2 %v1534_v25  ;;  %860 = vmatpush.bf16.msra.mxu3 %v1536_v32 }
 0x200   :  { %822 = vmatpush.bf16.msra.mxu0 %v1541_v39  ;;  %835 = vmatpush.bf16.msra.mxu1 %v1547_v47 }
 0x201   :  { %848 = vmatpush.bf16.msra.mxu2 %v1553_v59  ;;  %861 = vmatpush.bf16.msra.mxu3 %v1555_v49 }
 0x204   :  { %823 = vmatpush.bf16.msra.mxu0 %v2111_v19  ;;  %836 = vmatpush.bf16.msra.mxu1 %v2112_v5 }
 0x205   :  { %849 = vmatpush.bf16.msra.mxu2 %v2113_v12  ;;  %862 = vmatpush.bf16.msra.mxu3 %v2114_v24 }
 0x263   :  { %v677_v12 = vpop.f32.mrf.mxu0  ;;  %v690_v24 = vpop.f32.mrf.mxu1 }
 0x264   :  { %v721_v5 = vadd.f32 %v690_v24, %v271_v21  ;;  %v720_v19 = vadd.f32 %v677_v12, %v270_v34  ;;  %v51_v24 = vld [vmem:[%s2037_s0 + $0x28] sm:$0xff]  ;;  %v2120_v34 = vmov 1  }
 0x265   :  { %83 = vperm.xlu2 %1252, %v51_v24   ;;  %203 = vperm.xlu1 %1251, %v51_v24   ;;  %v2121_v24 = vmov 0  }
 0x266   :  { %1288 = vtanh.f32 %v721_v5  ;;  %1253 = vset.pattern.permute.xlu0 %v2120_v34 }
 0x267   :  { %1290 = vtanh.f32 %v720_v19  ;;  %v273_v19 = vadd.f32 %v241_v28, %v165_v33 }
 0x26a   :  { %v703_v12 = vpop.f32.mrf.mxu2  ;;  %v716_v20 = vpop.f32.mrf.mxu3 }
 0x26b   :  { %v722_v5 = vadd.f32 %v703_v12, %v272_v0  ;;  %v679_v13 = vpop.f32.mrf.mxu0  ;;  %v692_v38 = vpop.f32.mrf.mxu1  ;;  %v723_v21 = vadd.f32 %v716_v20, %v273_v19 }
 0x26c   :  { %v1289_v43 = vpop.eup %1288 }
 0x26d   :  { %1292 = vtanh.f32 %v722_v5  ;;  %v1291_v56 = vpop.eup %1290  ;;  %v729_v55 = vmul.f32 %v1289_v43, %v1633_v30  ;;  %1254 = vset.pattern.permute.xlu1 %v2121_v24 }
 0x26e   :  { %v728_v52 = vmul.f32 %v1291_v56, %v1630_v7  ;;  %1294 = vtanh.f32 %v723_v21  ;;  %v2125_v21 = vld [vmem:[#allocation20_spill] sm:$0xff] }
 0x26f   :  { %v733_v26 = vadd.f32 %v729_v55, %v1642_v53  ;;  %v2124_v55 = vld [vmem:[#allocation19_spill] sm:$0xff] }
 0x270   :  { %v732_v12 = vadd.f32 %v728_v52, %v1639_v46  ;;  %v79_v52 = vpop.permute.xlu0 %78 }
 0x271   :  { %v736_v28 = vmul.f32 %v733_v26, %v1800_v42  ;;  %v2122_v26 = vld [vmem:[#allocation14_spill] sm:$0xff]  ;;  %v2123_v42 = vld [vmem:[#allocation16_spill] sm:$0xff] }
 0x272   :  { %v705_v58 = vpop.f32.mrf.mxu2  ;;  %v718_v15 = vpop.f32.mrf.mxu3 }
 0x273   :  { %v1293_v37 = vpop.eup %1292  ;;  %v2126_v58 = vld [vmem:[#allocation9_spill] sm:$0xff] }
 0x274   :  { %v730_v0 = vmul.f32 %v1293_v37, %v1637_v40  ;;  %v1295_v5 = vpop.eup %1294  ;;  %v126_v37 = vmul.f32 %v2126_v58, %v79_v52 }
 0x275   :  { %v731_v15 = vmul.f32 %v1295_v5, %v1661_v48  ;;  %v2128_v5 = vld [vmem:[#allocation15_spill] sm:$0xff] }
 0x276   :  { %v734_v33 = vadd.f32 %v730_v0, %v1644_v60  ;;  %v2127_v0 = vld [vmem:[#allocation8_spill] sm:$0xff] }
 0x277   :  { %v735_v38 = vadd.f32 %v731_v15, %v1670_v1 }
 0x278   :  { %v737_v20 = vmul.f32 %v734_v33, %v732_v12  ;;  %v125_v12 = vmul.f32 %v2127_v0, %v79_v52  ;;  %v200_v33 = vpop.permute.xlu1 %199  ;;  %v128_v0 = vmul.f32 %v2110_v62, %v79_v52 }
 0x279   :  { %v242_v15 = vmul.f32 %v2128_v5, %v200_v33  ;;  %v244_v58 = vmul.f32 %v2109_v2, %v200_v33 }
 0x27a   :  { %v1864_v13 = vadd.f32 %v737_v20, %v736_v28  ;;  %v167_v28 = vadd.f32 %v1564_v8, %v126_v37  ;;  %v243_v20 = vmul.f32 %v2117_v44, %v200_v33  ;;  %v166_v24 = vadd.f32 %v1558_v63, %v125_v12  ;;  %v2129_v8 = vld [vmem:[#allocation23_spill] sm:$0xff]  ;;  %v2130_v63 = vld [vmem:[#allocation22_spill] sm:$0xff] }
 0x27b   :  { %v169_v12 = vadd.f32 %v2129_v8, %v128_v0  ;;  %v245_v5 = vmul.f32 %v2130_v63, %v200_v33 }
 0x27c   :  { %1296 = vtanh.f32 %v1864_v13 }
 0x282   :  { %v1297_v43 = vpop.eup %1296 }
 0x283   :  { %v740_v19 = vmul.f32 %v1297_v43, %v735_v38  ;;  %v127_v38 = vmul.f32 %v2119_v29, %v79_v52  ;;  %v275_v43 = vadd.f32 %v243_v20, %v167_v28  ;;  %v52_v28 = vld [vmem:[%s2037_s0 + $0x30] sm:$0xff] }
 0x284   :  { %207 = vperm.xlu0 %1253, %v52_v28   ;;  %88 = vperm.xlu2 %1252, %v52_v28  }
 0x285   :  { %v741_v56 = vpack.c.bf16 %v740_v19, %v740_v19  ;;  %v274_v19 = vadd.f32 %v242_v15, %v166_v24 }
 0x287   :  { %750 = vmatmul.bf16.vlgmr.msrb.gmra.mxu0 %v741_v56  ;;  %763 = vmatmul.bf16.vlgmr.msrb.gmra.mxu1 %v741_v56 }
 0x288   :  { %776 = vmatmul.bf16.vlgmr.msrb.gmra.mxu2 %v741_v56  ;;  %789 = vmatmul.bf16.vlgmr.msrb.gmra.mxu3 %v741_v56 }
 0x289   :  { %890 = vmatpush.bf16.msrb.mxu0 %v1452_v6  ;;  %903 = vmatpush.bf16.msrb.mxu1 %v1454_v10 }
 0x28a   :  { %916 = vmatpush.bf16.msrb.mxu2 %v1456_v11  ;;  %929 = vmatpush.bf16.msrb.mxu3 %v1459_v14 }
 0x28c   :  { %1255 = vset.pattern.permute.xlu2 %v2120_v34 }
 0x28d   :  { %891 = vmatpush.bf16.msrb.mxu0 %v1464_v18  ;;  %904 = vmatpush.bf16.msrb.mxu1 %v1466_v22 }
 0x28e   :  { %917 = vmatpush.bf16.msrb.mxu2 %v1468_v23  ;;  %930 = vmatpush.bf16.msrb.mxu3 %v1476_v27 }
 0x291   :  { %892 = vmatpush.bf16.msrb.mxu0 %v1481_v31  ;;  %905 = vmatpush.bf16.msrb.mxu1 %v1483_v35 }
 0x292   :  { %918 = vmatpush.bf16.msrb.mxu2 %v1485_v36  ;;  %931 = vmatpush.bf16.msrb.mxu3 %v1490_v41 }
 0x295   :  { %893 = vmatpush.bf16.msrb.mxu0 %v1495_v45  ;;  %906 = vmatpush.bf16.msrb.mxu1 %v1498_v50 }
 0x296   :  { %919 = vmatpush.bf16.msrb.mxu2 %v1500_v51  ;;  %932 = vmatpush.bf16.msrb.mxu3 %v1508_v57 }
 0x299   :  { %894 = vmatpush.bf16.msrb.mxu0 %v1513_v61  ;;  %907 = vmatpush.bf16.msrb.mxu1 %v1515_v3 }
 0x29a   :  { %920 = vmatpush.bf16.msrb.mxu2 %v1517_v4  ;;  %933 = vmatpush.bf16.msrb.mxu3 %v1520_v9 }
 0x29d   :  { %895 = vmatpush.bf16.msrb.mxu0 %v1524_v16  ;;  %908 = vmatpush.bf16.msrb.mxu1 %v1526_v17 }
 0x29e   :  { %921 = vmatpush.bf16.msrb.mxu2 %v1534_v25  ;;  %934 = vmatpush.bf16.msrb.mxu3 %v1536_v32 }
 0x2a1   :  { %896 = vmatpush.bf16.msrb.mxu0 %v1541_v39  ;;  %909 = vmatpush.bf16.msrb.mxu1 %v1547_v47 }
 0x2a2   :  { %922 = vmatpush.bf16.msrb.mxu2 %v1553_v59  ;;  %935 = vmatpush.bf16.msrb.mxu3 %v1555_v49 }
 0x2a5   :  { %897 = vmatpush.bf16.msrb.mxu0 %v2122_v26  ;;  %910 = vmatpush.bf16.msrb.mxu1 %v2123_v42 }
 0x2a6   :  { %923 = vmatpush.bf16.msrb.mxu2 %v2124_v55  ;;  %936 = vmatpush.bf16.msrb.mxu3 %v2125_v21  ;;  %v168_v55 = vadd.f32 %v2108_v54, %v127_v38 }
 0x2a8   :  { %v276_v44 = vadd.f32 %v244_v58, %v168_v55 }
 0x304   :  { %v751_v56 = vpop.f32.mrf.mxu0  ;;  %v764_v21 = vpop.f32.mrf.mxu1 }
 0x305   :  { %v795_v42 = vadd.f32 %v764_v21, %v275_v43  ;;  %v794_v37 = vadd.f32 %v751_v56, %v274_v19  ;;  %v277_v21 = vadd.f32 %v245_v5, %v169_v12 }
 0x307   :  { %1298 = vtanh.f32 %v795_v42 }
 0x308   :  { %1300 = vtanh.f32 %v794_v37 }
 0x30b   :  { %v777_v20 = vpop.f32.mrf.mxu2  ;;  %v790_v24 = vpop.f32.mrf.mxu3 }
 0x30c   :  { %v796_v15 = vadd.f32 %v777_v20, %v276_v44  ;;  %v753_v38 = vpop.f32.mrf.mxu0  ;;  %v766_v52 = vpop.f32.mrf.mxu1  ;;  %v797_v58 = vadd.f32 %v790_v24, %v277_v21 }
 0x30d   :  { %v1299_v43 = vpop.eup %1298 }
 0x30e   :  { %1302 = vtanh.f32 %v796_v15  ;;  %v1301_v42 = vpop.eup %1300  ;;  %v803_v55 = vmul.f32 %v1299_v43, %v1633_v30 }
 0x30f   :  { %v802_v0 = vmul.f32 %v1301_v42, %v1630_v7  ;;  %1304 = vtanh.f32 %v797_v58 }
 0x310   :  { %v807_v37 = vadd.f32 %v803_v55, %v1642_v53 }
 0x311   :  { %v806_v5 = vadd.f32 %v802_v0, %v1639_v46 }
 0x312   :  { %v810_v28 = vmul.f32 %v807_v37, %v1864_v13 }
 0x313   :  { %v779_v33 = vpop.f32.mrf.mxu2  ;;  %v792_v19 = vpop.f32.mrf.mxu3 }
 0x314   :  { %v1303_v56 = vpop.eup %1302 }
 0x315   :  { %v804_v44 = vmul.f32 %v1303_v56, %v1637_v40  ;;  %v1305_v24 = vpop.eup %1304 }
 0x316   :  { %v805_v34 = vmul.f32 %v1305_v24, %v1661_v48 }
 0x317   :  { %v808_v12 = vadd.f32 %v804_v44, %v1644_v60 }
 0x318   :  { %v809_v38 = vadd.f32 %v805_v34, %v1670_v1 }
 0x319   :  { %v811_v20 = vmul.f32 %v808_v12, %v806_v5 }
 0x31b   :  { %v1924_v15 = vadd.f32 %v811_v20, %v810_v28 }
 0x31d   :  { %1306 = vtanh.f32 %v1924_v15 }
 0x323   :  { %v1307_v52 = vpop.eup %1306 }
 0x324   :  { %v814_v21 = vmul.f32 %v1307_v52, %v809_v38 }
 0x326   :  { %v815_v43 = vpack.c.bf16 %v814_v21, %v814_v21 }
 0x328   :  { %824 = vmatmul.bf16.vlgmr.msra.gmra.mxu0 %v815_v43  ;;  %837 = vmatmul.bf16.vlgmr.msra.gmra.mxu1 %v815_v43 }
 0x329   :  { %850 = vmatmul.bf16.vlgmr.msra.gmra.mxu2 %v815_v43  ;;  %863 = vmatmul.bf16.vlgmr.msra.gmra.mxu3 %v815_v43 }
 0x32a   :  { %964 = vmatpush.bf16.msra.mxu0 %v1452_v6  ;;  %977 = vmatpush.bf16.msra.mxu1 %v1454_v10  ;;  %v2131_v6 = vld [vmem:[#allocation16_spill] sm:$0xff]  ;;  %v2132_v10 = vld [vmem:[#allocation19_spill] sm:$0xff] }
 0x32b   :  { %990 = vmatpush.bf16.msra.mxu2 %v1456_v11  ;;  %1003 = vmatpush.bf16.msra.mxu3 %v1459_v14  ;;  %v2133_v11 = vld [vmem:[#allocation20_spill] sm:$0xff]  ;;  %v84_v14 = vpop.permute.xlu2 %83 }
 0x32e   :  { %965 = vmatpush.bf16.msra.mxu0 %v1464_v18  ;;  %978 = vmatpush.bf16.msra.mxu1 %v1466_v22  ;;  %v2134_v18 = vld [vmem:[#allocation9_spill] sm:$0xff] }
 0x32f   :  { %991 = vmatpush.bf16.msra.mxu2 %v1468_v23  ;;  %1004 = vmatpush.bf16.msra.mxu3 %v1476_v27  ;;  %v130_v22 = vmul.f32 %v2134_v18, %v84_v14  ;;  %v2135_v23 = vld [vmem:[#allocation8_spill] sm:$0xff] }
 0x330   :  { %v129_v27 = vmul.f32 %v2135_v23, %v84_v14 }
 0x332   :  { %966 = vmatpush.bf16.msra.mxu0 %v1481_v31  ;;  %979 = vmatpush.bf16.msra.mxu1 %v1483_v35  ;;  %v204_v31 = vpop.permute.xlu1 %203  ;;  %v2136_v35 = vld [vmem:[#allocation12_spill] sm:$0xff] }
 0x333   :  { %992 = vmatpush.bf16.msra.mxu2 %v1485_v36  ;;  %1005 = vmatpush.bf16.msra.mxu3 %v1490_v41  ;;  %v171_v36 = vadd.f32 %v2136_v35, %v130_v22  ;;  %v2137_v41 = vld [vmem:[#allocation17_spill] sm:$0xff]  ;;  %v249_v42 = vmul.f32 %v2130_v63, %v204_v31 }
 0x336   :  { %967 = vmatpush.bf16.msra.mxu0 %v1495_v45  ;;  %980 = vmatpush.bf16.msra.mxu1 %v1498_v50  ;;  %v247_v45 = vmul.f32 %v2137_v41, %v204_v31  ;;  %v2138_v50 = vld [vmem:[#allocation11_spill] sm:$0xff] }
 0x337   :  { %993 = vmatpush.bf16.msra.mxu2 %v1500_v51  ;;  %1006 = vmatpush.bf16.msra.mxu3 %v1508_v57  ;;  %v170_v51 = vadd.f32 %v2138_v50, %v129_v27  ;;  %v2139_v57 = vld [vmem:[#allocation15_spill] sm:$0xff] }
 0x33a   :  { %968 = vmatpush.bf16.msra.mxu0 %v1513_v61  ;;  %981 = vmatpush.bf16.msra.mxu1 %v1515_v3  ;;  %v246_v61 = vmul.f32 %v2139_v57, %v204_v31  ;;  %v131_v3 = vmul.f32 %v2119_v29, %v84_v14 }
 0x33b   :  { %994 = vmatpush.bf16.msra.mxu2 %v1517_v4  ;;  %1007 = vmatpush.bf16.msra.mxu3 %v1520_v9  ;;  %v279_v4 = vadd.f32 %v247_v45, %v171_v36  ;;  %v89_v45 = vpop.permute.xlu2 %88 }
 0x33c   :  { %v278_v9 = vadd.f32 %v246_v61, %v170_v51  ;;  %v134_v51 = vmul.f32 %v2134_v18, %v89_v45  ;;  %v208_v61 = vpop.permute.xlu0 %207 }
 0x33e   :  { %969 = vmatpush.bf16.msra.mxu0 %v1524_v16  ;;  %982 = vmatpush.bf16.msra.mxu1 %v1526_v17 }
 0x33f   :  { %995 = vmatpush.bf16.msra.mxu2 %v1534_v25  ;;  %1008 = vmatpush.bf16.msra.mxu3 %v1536_v32 }
 0x342   :  { %970 = vmatpush.bf16.msra.mxu0 %v1541_v39  ;;  %983 = vmatpush.bf16.msra.mxu1 %v1547_v47  ;;  %v172_v39 = vadd.f32 %v2108_v54, %v131_v3  ;;  %v248_v47 = vmul.f32 %v2109_v2, %v204_v31  ;;  %v251_v3 = vmul.f32 %v2137_v41, %v208_v61 }
 0x343   :  { %996 = vmatpush.bf16.msra.mxu2 %v1553_v59  ;;  %1009 = vmatpush.bf16.msra.mxu3 %v1555_v49  ;;  %v132_v59 = vmul.f32 %v2110_v62, %v84_v14 }
 0x344   :  { %v280_v49 = vadd.f32 %v248_v47, %v172_v39 }
 0x346   :  { %971 = vmatpush.bf16.msra.mxu0 %v2122_v26  ;;  %984 = vmatpush.bf16.msra.mxu1 %v2131_v6  ;;  %v173_v26 = vadd.f32 %v2129_v8, %v132_v59 }
 0x347   :  { %997 = vmatpush.bf16.msra.mxu2 %v2132_v10  ;;  %1010 = vmatpush.bf16.msra.mxu3 %v2133_v11 }
 0x348   :  { %v281_v56 = vadd.f32 %v249_v42, %v173_v26  ;;  %v136_v42 = vmul.f32 %v2110_v62, %v89_v45 }
 0x3a5   :  { %v825_v16 = vpop.f32.mrf.mxu0  ;;  %v838_v17 = vpop.f32.mrf.mxu1 }
 0x3a6   :  { %v869_v25 = vadd.f32 %v838_v17, %v279_v4  ;;  %v868_v32 = vadd.f32 %v825_v16, %v278_v9  ;;  %v175_v4 = vadd.f32 %v2136_v35, %v134_v51  ;;  %v250_v9 = vmul.f32 %v2139_v57, %v208_v61 }
 0x3a7   :  { %v135_v17 = vmul.f32 %v2119_v29, %v89_v45 }
 0x3a8   :  { %1308 = vtanh.f32 %v869_v25  ;;  %v283_v25 = vadd.f32 %v251_v3, %v175_v4 }
 0x3a9   :  { %1310 = vtanh.f32 %v868_v32  ;;  %v176_v26 = vadd.f32 %v2108_v54, %v135_v17 }
 0x3ac   :  { %v851_v13 = vpop.f32.mrf.mxu2  ;;  %v864_v55 = vpop.f32.mrf.mxu3 }
 0x3ad   :  { %v870_v58 = vadd.f32 %v851_v13, %v280_v49  ;;  %v827_v0 = vpop.f32.mrf.mxu0  ;;  %v840_v33 = vpop.f32.mrf.mxu1  ;;  %v871_v5 = vadd.f32 %v864_v55, %v281_v56  ;;  %v252_v49 = vmul.f32 %v2109_v2, %v208_v61  ;;  %v53_v55 = vld [vmem:[%s2037_s0 + $0x38] sm:$0xff] }
 0x3ae   :  { %v1309_v19 = vpop.eup %1308  ;;  %93 = vperm.xlu1 %1254, %v53_v55   ;;  %211 = vperm.xlu2 %1255, %v53_v55   ;;  %v253_v0 = vmul.f32 %v2130_v63, %v208_v61 }
 0x3af   :  { %1312 = vtanh.f32 %v870_v58  ;;  %v1311_v37 = vpop.eup %1310  ;;  %v877_v44 = vmul.f32 %v1309_v19, %v1633_v30  ;;  %v284_v58 = vadd.f32 %v252_v49, %v176_v26  ;;  %v177_v19 = vadd.f32 %v2129_v8, %v136_v42 }
 0x3b0   :  { %v876_v12 = vmul.f32 %v1311_v37, %v1630_v7  ;;  %1314 = vtanh.f32 %v871_v5 }
 0x3b1   :  { %v881_v34 = vadd.f32 %v877_v44, %v1642_v53 }
 0x3b2   :  { %v880_v52 = vadd.f32 %v876_v12, %v1639_v46 }
 0x3b3   :  { %v884_v43 = vmul.f32 %v881_v34, %v1924_v15  ;;  %v133_v15 = vmul.f32 %v2135_v23, %v89_v45 }
 0x3b4   :  { %v853_v28 = vpop.f32.mrf.mxu2  ;;  %v866_v20 = vpop.f32.mrf.mxu3 }
 0x3b5   :  { %v1313_v24 = vpop.eup %1312  ;;  %v174_v16 = vadd.f32 %v2138_v50, %v133_v15  ;;  %v285_v28 = vadd.f32 %v253_v0, %v177_v19 }
 0x3b6   :  { %v878_v38 = vmul.f32 %v1313_v24, %v1637_v40  ;;  %v1315_v10 = vpop.eup %1314 }
 0x3b7   :  { %v879_v14 = vmul.f32 %v1315_v10, %v1661_v48  ;;  %v282_v32 = vadd.f32 %v250_v9, %v174_v16 }
 0x3b8   :  { %v882_v21 = vadd.f32 %v878_v38, %v1644_v60 }
 0x3b9   :  { %v883_v22 = vadd.f32 %v879_v14, %v1670_v1 }
 0x3ba   :  { %v885_v6 = vmul.f32 %v882_v21, %v880_v52 }
 0x3bc   :  { %v886_v11 = vadd.f32 %v885_v6, %v884_v43 }
 0x3be   :  { %1316 = vtanh.f32 %v886_v11 }
 0x3c4   :  { %v1317_v27 = vpop.eup %1316 }
 0x3c5   :  { %v888_v31 = vmul.f32 %v1317_v27, %v883_v22 }
 0x3c7   :  { %v889_v36 = vpack.c.bf16 %v888_v31, %v888_v31 }
 0x3c9   :  { %898 = vmatmul.bf16.vlgmr.msrb.gmra.mxu0 %v889_v36  ;;  %911 = vmatmul.bf16.vlgmr.msrb.gmra.mxu1 %v889_v36 }
 0x3ca   :  { %924 = vmatmul.bf16.vlgmr.msrb.gmra.mxu2 %v889_v36  ;;  %937 = vmatmul.bf16.vlgmr.msrb.gmra.mxu3 %v889_v36 }
 0x408   :  { %v212_v17 = vpop.permute.xlu2 %211 }
 0x420   :  { %v94_v9 = vpop.permute.xlu1 %93 }
 0x421   :  { %v138_v16 = vmul.f32 %v2134_v18, %v94_v9  ;;  %v256_v18 = vmul.f32 %v2109_v2, %v212_v17 }
 0x446   :  { %v899_v39 = vpop.f32.mrf.mxu0  ;;  %v912_v47 = vpop.f32.mrf.mxu1 }
 0x447   :  { %v943_v59 = vadd.f32 %v912_v47, %v283_v25  ;;  %v942_v13 = vadd.f32 %v899_v39, %v282_v32  ;;  %v179_v25 = vadd.f32 %v2136_v35, %v138_v16  ;;  %v255_v32 = vmul.f32 %v2137_v41, %v212_v17 }
 0x448   :  { %v254_v47 = vmul.f32 %v2139_v57, %v212_v17  ;;  %v257_v57 = vmul.f32 %v2130_v63, %v212_v17 }
 0x449   :  { %1318 = vtanh.f32 %v943_v59  ;;  %v139_v59 = vmul.f32 %v2119_v29, %v94_v9  ;;  %v287_v49 = vadd.f32 %v255_v32, %v179_v25 }
 0x44a   :  { %1320 = vtanh.f32 %v942_v13 }
 0x44b   :  { %v180_v55 = vadd.f32 %v2108_v54, %v139_v59 }
 0x44d   :  { %v925_v33 = vpop.f32.mrf.mxu2  ;;  %v938_v56 = vpop.f32.mrf.mxu3  ;;  %v288_v41 = vadd.f32 %v256_v18, %v180_v55 }
 0x44e   :  { %v944_v37 = vadd.f32 %v925_v33, %v284_v58  ;;  %v901_v44 = vpop.f32.mrf.mxu0  ;;  %v914_v5 = vpop.f32.mrf.mxu1  ;;  %v945_v34 = vadd.f32 %v938_v56, %v285_v28 }
 0x44f   :  { %v1319_v12 = vpop.eup %1318 }
 0x450   :  { %1322 = vtanh.f32 %v944_v37  ;;  %v1321_v20 = vpop.eup %1320  ;;  %v951_v24 = vmul.f32 %v1319_v12, %v1633_v30 }
 0x451   :  { %v950_v38 = vmul.f32 %v1321_v20, %v1630_v7  ;;  %1324 = vtanh.f32 %v945_v34 }
 0x452   :  { %v955_v6 = vadd.f32 %v951_v24, %v1642_v53 }
 0x453   :  { %v954_v14 = vadd.f32 %v950_v38, %v1639_v46 }
 0x454   :  { %v958_v27 = vmul.f32 %v955_v6, %v886_v11  ;;  %v137_v11 = vmul.f32 %v2135_v23, %v94_v9  ;;  %v140_v23 = vmul.f32 %v2110_v62, %v94_v9 }
 0x455   :  { %v927_v52 = vpop.f32.mrf.mxu2  ;;  %v940_v21 = vpop.f32.mrf.mxu3 }
 0x456   :  { %v1323_v43 = vpop.eup %1322  ;;  %v178_v39 = vadd.f32 %v2138_v50, %v137_v11  ;;  %v181_v50 = vadd.f32 %v2129_v8, %v140_v23 }
 0x457   :  { %v952_v10 = vmul.f32 %v1323_v43, %v1637_v40  ;;  %v1325_v36 = vpop.eup %1324 }
 0x458   :  { %v953_v51 = vmul.f32 %v1325_v36, %v1661_v48  ;;  %v286_v13 = vadd.f32 %v254_v47, %v178_v39  ;;  %v289_v37 = vadd.f32 %v257_v57, %v181_v50 }
 0x459   :  { %v956_v22 = vadd.f32 %v952_v10, %v1644_v60 }
 0x45a   :  { %v957_v15 = vadd.f32 %v953_v51, %v1670_v1 }
 0x45b   :  { %v959_v31 = vmul.f32 %v956_v22, %v954_v14 }
 0x45d   :  { %v960_v45 = vadd.f32 %v959_v31, %v958_v27 }
 0x45f   :  { %1326 = vtanh.f32 %v960_v45 }
 0x465   :  { %v1327_v61 = vpop.eup %1326 }
 0x466   :  { %v962_v3 = vmul.f32 %v1327_v61, %v957_v15 }
 0x468   :  { %v963_v4 = vpack.c.bf16 %v962_v3, %v962_v3 }
 0x46a   :  { %972 = vmatmul.bf16.vlgmr.msra.gmra.mxu0 %v963_v4  ;;  %985 = vmatmul.bf16.vlgmr.msra.gmra.mxu1 %v963_v4 }
 0x46b   :  { %998 = vmatmul.bf16.vlgmr.msra.gmra.mxu2 %v963_v4  ;;  %1011 = vmatmul.bf16.vlgmr.msra.gmra.mxu3 %v963_v4 }
 0x4e7   :  { %v973_v26 = vpop.f32.mrf.mxu0  ;;  %v986_v42 = vpop.f32.mrf.mxu1 }
 0x4e8   :  { %v1017_v58 = vadd.f32 %v986_v42, %v287_v49  ;;  %v1016_v35 = vadd.f32 %v973_v26, %v286_v13 }
 0x4ea   :  { %1328 = vtanh.f32 %v1017_v58 }
 0x4eb   :  { %1330 = vtanh.f32 %v1016_v35 }
 0x4ee   :  { %v999_v29 = vpop.f32.mrf.mxu2  ;;  %v1012_v0 = vpop.f32.mrf.mxu3 }
 0x4ef   :  { %v1018_v33 = vadd.f32 %v999_v29, %v288_v41  ;;  %v975_v19 = vpop.f32.mrf.mxu0  ;;  %v988_v56 = vpop.f32.mrf.mxu1  ;;  %v1019_v44 = vadd.f32 %v1012_v0, %v289_v37 }
 0x4f0   :  { %v1329_v54 = vpop.eup %1328 }
 0x4f1   :  { %1332 = vtanh.f32 %v1018_v33  ;;  %v1331_v2 = vpop.eup %1330  ;;  %v1025_v62 = vmul.f32 %v1329_v54, %v1633_v30 }
 0x4f2   :  { %v1024_v5 = vmul.f32 %v1331_v2, %v1630_v7  ;;  %1334 = vtanh.f32 %v1019_v44  ;;  %v1037_v7 = vld [vmem:[%s2043_s6] sm:$0x3]  ;;  %s1065_s6 = sshll.u32 %s1395_s2, 4  ;;  %s1066_s6 = int_to_ptr.vmem [resolvable:$true] %s1065_s6 }
 0x4f3   :  { %v1029_v63 = vadd.f32 %v1025_v62, %v1642_v53  ;;  %v1049_v6 = vperm.slane %v1037_v7, 1 }
 0x4f4   :  { %v1028_v24 = vadd.f32 %v1024_v5, %v1639_v46 }
 0x4f5   :  { %v1032_v38 = vmul.f32 %v1029_v63, %v960_v45 }
 0x4f6   :  { %v1001_v12 = vpop.f32.mrf.mxu2  ;;  %v1014_v28 = vpop.f32.mrf.mxu3 }
 0x4f7   :  { %v1333_v8 = vpop.eup %1332 }
 0x4f8   :  { %v1026_v20 = vmul.f32 %v1333_v8, %v1637_v40  ;;  %v1335_v21 = vpop.eup %1334  ;;  %v1038_v40 = vperm.slane %v1037_v7, 0 }
 0x4f9   :  { %v1027_v30 = vmul.f32 %v1335_v21, %v1661_v48  ;;  %v1257_v48 = vld [vmem:[%s2044_s7] ss:$0 sm:$0xff] }
 0x4fa   :  { %v1030_v34 = vadd.f32 %v1026_v20, %v1644_v60  ;;  %v1256_v60 = vld [vmem:[%s2044_s7] ss:$0 sm:$0xff] }
 0x4fb   :  { %v1031_v53 = vadd.f32 %v1027_v30, %v1670_v1 }
 0x4fc   :  { %v1033_v52 = vmul.f32 %v1030_v34, %v1028_v24 }
 0x4fe   :  { %v1034_v43 = vadd.f32 %v1033_v52, %v1032_v38 }
 0x500   :  { %1336 = vtanh.f32 %v1034_v43 }
 0x506   :  { %v1337_v10 = vpop.eup %1336 }
 0x507   :  { %v1036_v14 = vmul.f32 %v1337_v10, %v1031_v53 }
 0x509   :  { %v1050_v46 = vmul.f32 %v1049_v6, %v1036_v14  ;;  %v1039_v22 = vmul.f32 %v1038_v40, %v1036_v14 }
 0x50b   :  { %1051 = vadd.xlane.f32.xlu2 %v1050_v46  ;;  %1040 = vadd.xlane.f32.xlu1 %v1039_v22 }
 0x57e   :  { %v1052_v1 = vpop.xlane.xlu2 %1051  ;;  %v1041_v27 = vpop.xlane.xlu1 %1040 }
 0x57f   :  { %v1057_v31 = vadd.f32 %v1256_v60, %v1052_v1  ;;  %v1046_v36 = vadd.f32 %v1257_v48, %v1041_v27 }
 0x581   :  { %1048 = vst.msk [vmem:[#allocation5] sm:$0x3] %vm1047_vm0, %v1046_v36 }
 0x582   :  { %1059 = vst.msk [vmem:[#allocation5] sm:$0x3] %vm1058_vm1, %v1057_v31 }
 0x583   :  { %1070 = dma.vmem_to_hbm [thread:$0]  %s1066_s6, 32, %s1068_s15, [#allocation4]  }
 0x584   :  { %1388 = dma.done.wait [#allocation4], 32  }
 0x585   :  { %1389 = vsyncadd [#allocation4], 4294967264 }
 0x586   :  { %1075 = vsyncpa [#allocation3], 1 }
 0x587   :  { %1076 = vsyncpa [#allocation4], 1 }

</bundles_post_ra>
